<compile_context>
chip_gen: v7x
topology: tpu7x:2x2x1
jax: 0.10.0
libtpu: 0.0.40
codegen_flags: <defaults>
</compile_context>

<pallas_src>
import jax
import jax.numpy as jnp
from jax import lax
from jax.experimental import pallas as pl
from jax.experimental.pallas import tpu as pltpu

ALPHA = 0.8            # sample(0.8, ...)
BN_EPS = 1e-5          # nn.BatchNorm1d default eps
LANE = 128             # TPU lane width; node & feature axes padded to this

# MXU operands in bf16 (accumulation stays f32 via preferred_element_type).
# Set back to jnp.float32 for bit-closer f32 numerics.
MXU_DTYPE = jnp.bfloat16


def _mm(a, b):
    return jnp.dot(a.astype(MXU_DTYPE), b.astype(MXU_DTYPE),
                   preferred_element_type=jnp.float32)


def _ceil_to(v, m):
    return ((v + m - 1) // m) * m


def _pad2(a, rows, cols):
    return jnp.pad(a, ((0, rows - a.shape[0]), (0, cols - a.shape[1])))


# ------------------------------ fused kernel ---------------------------------
def _make_kernel(n):
    """Fused GCN_AUG forward; `n` = true node count (shapes are padded)."""

    def kernel(prelu_ref, x_ref, adj_ref, u_ref, rmask_ref,
               w0_ref, b0_ref, w1_ref, b1_ref, gamma_ref, beta_ref,
               x2_ref, z_ref, adj_s_ref, logits_ref):
        n_p = adj_ref.shape[0]

        x = x_ref[...]            # (n_p, in_p)  zero-padded rows / cols
        adj = adj_ref[...]        # (n_p, n_p)   A[i,j]=1 for edge i->j, padded 0
        rmask = rmask_ref[...]    # (n_p, 1)     1.0 on the n valid rows else 0.0
        b0 = b0_ref[...]          # (1, hid_p)

        # Shared linear transform X @ W0 (conv0 is applied on BOTH graphs).
        xw0 = _mm(x, w0_ref[...])                                 # (n_p, hid_p)

        # ---- conv0 on the original graph (sample()): M0 = A^T + I, +I folded ----
        adj_t = jnp.transpose(adj)        # one in-kernel XLU transpose, no 2nd DMA
        deg0 = jnp.sum(adj_t, axis=1, keepdims=True) + 1.0        # in-deg + self loop
        dinv0 = lax.rsqrt(deg0)
        v0 = dinv0 * xw0
        z0 = (dinv0 * (_mm(adj_t, v0) + v0) + b0) * rmask         # padded rows -> 0

        # ---- adjacency logits z0 @ z0^T (contract the feature axis) ----
        z0m = z0.astype(MXU_DTYPE)
        logits = lax.dot_general(z0m, z0m, (((1,), (1,)), ((), ())),
                                 preferred_element_type=jnp.float32)  # (n_p, n_p)
        logits_ref[...] = logits          # lane-dense store (n_p multiple of 128)

        # ---- edge probabilities (scalar max hoisted to one scale) ----
        # Padded rows/cols of logits are exactly 0 and diag(logits) >= 0, so the
        # full-tile max equals the max over the valid (n, n) block (matches the
        # reference; no guard on max ~ 0, same as the PyTorch module).
        inv_mx = 1.0 / jnp.max(logits)
        probs = jnp.maximum(ALPHA * (logits * inv_mx) + (1.0 - ALPHA) * adj, 0.0)

        # ---- RelaxedBernoulliStraightThrough(T=1) forward value ----
        # round(sigmoid(logit(p) + logit(u))) == (p + u >= 1): no transcendentals.
        row = lax.broadcasted_iota(jnp.int32, (n_p, n_p), 0)
        col = lax.broadcasted_iota(jnp.int32, (n_p, n_p), 1)
        valid = (row < n) & (col < n)
        hard = jnp.where((probs + u_ref[...] >= 1.0) & valid, 1.0, 0.0)

        # triu(hard,1) + its transpose, diag <- 1 : one transpose + two selects.
        # Padded diagonal entries also get 1 so deg1 >= 1 everywhere (no inf/nan
        # can reach the MXU); they are sliced away in the wrapper.
        hard_t = jnp.transpose(hard)
        adj_s = jnp.where(row == col, 1.0, jnp.where(col > row, hard, hard_t))
        adj_s_ref[...] = adj_s

        # ---- conv0 on the sampled graph ----
        # adj_s already carries the self loops; dinv1 computed once, reused by
        # both sampled-graph layers.  bf16 copy of adj_s made once (0/1 exact).
        adj_s_m = adj_s.astype(MXU_DTYPE)
        deg1 = jnp.sum(adj_s, axis=1, keepdims=True)              # exact f32 rowsum
        dinv1 = lax.rsqrt(deg1)
        v1 = dinv1 * xw0
        x1 = (dinv1 * _mm(adj_s_m, v1) + b0) * rmask              # padded rows -> 0

        # PReLU
        a = prelu_ref[0, 0]
        z_ref[...] = jnp.where(x1 >= 0.0, x1, a * x1)

        # BatchNorm1d (training: batch stats over the n valid rows, biased var)
        # -> dropout(p=0.0) -> ReLU
        inv_n = 1.0 / float(n)
        mean = jnp.sum(x1, axis=0, keepdims=True) * inv_n
        diff = x1 - mean
        var = jnp.sum(diff * diff * rmask, axis=0, keepdims=True) * inv_n
        h = jnp.maximum(diff * lax.rsqrt(var + BN_EPS) * gamma_ref[...]
                        + beta_ref[...], 0.0) * rmask

        # ---- conv1 on the sampled graph ----
        v2 = dinv1 * _mm(h, w1_ref[...])
        x2_ref[...] = dinv1 * _mm(adj_s_m, v2) + b1_ref[...]

    return kernel


# --------------------------------- wrapper ------------------------------------
def init_params(key, in_channels, hidden, out_channels):
    k0, k1 = jax.random.split(key)

    def glorot(k, fi, fo):
        lim = (6.0 / (fi + fo)) ** 0.5
        return jax.random.uniform(k, (fi, fo), jnp.float32, -lim, lim)

    return {
        "w0": glorot(k0, in_channels, hidden),
        "b0": jnp.zeros((hidden,), jnp.float32),
        "w1": glorot(k1, hidden, out_channels),
        "b1": jnp.zeros((out_channels,), jnp.float32),
        "prelu_a": jnp.full((1, 1), 0.25, jnp.float32),   # nn.PReLU() default
        "bn_gamma": jnp.ones((1, hidden), jnp.float32),
        "bn_beta": jnp.zeros((1, hidden), jnp.float32),
    }


def gcn_aug_forward(params, x, edge_index, noise_key):
    n, in_c = x.shape
    hidden = params["w0"].shape[1]
    out_c = params["w1"].shape[1]
    n_p = _ceil_to(n, LANE)
    in_p, hid_p, out_p = (_ceil_to(d, LANE) for d in (in_c, hidden, out_c))

    # Dense adjacency built once with a single scatter; its transpose is taken
    # in-kernel, so only one (n_p, n_p) adjacency is DMA'd to VMEM.
    adj_orig = jnp.zeros((n, n), jnp.float32).at[edge_index[0], edge_index[1]].set(1.0)
    adj_p = _pad2(adj_orig, n_p, n_p)

    # Uniform noise for the straight-through Bernoulli draw.
    # TODO(synk): the on-chip PRNG (pltpu.prng_seed / prng_random_bits) would
    # avoid this (n_p, n_p) DMA but has no interpret/CPU lowering; pyro's RNG
    # stream cannot be bit-matched either way, only the distribution is kept.
    u = jax.random.uniform(noise_key, (n_p, n_p), jnp.float32)

    # Row-validity mask: forces padded rows of every intermediate to exact zero.
    rmask = jnp.where(jnp.arange(n_p) < n, 1.0, 0.0).astype(jnp.float32).reshape(n_p, 1)

    # Zero-pad all feature axes to the 128-lane width (lane-dense MXU operands
    # and unmasked output stores); padded columns stay exactly zero end-to-end.
    x_p = _pad2(x, n_p, in_p)
    w0_p = _pad2(params["w0"], in_p, hid_p)
    w1_p = _pad2(params["w1"], hid_p, out_p)
    b0_p = _pad2(params["b0"].reshape(1, -1), 1, hid_p)
    b1_p = _pad2(params["b1"].reshape(1, -1), 1, out_p)
    gamma_p = _pad2(params["bn_gamma"], 1, hid_p)
    beta_p = _pad2(params["bn_beta"], 1, hid_p)

    vmem = pl.BlockSpec(memory_space=pltpu.MemorySpace.VMEM)
    smem = pl.BlockSpec(memory_space=pltpu.MemorySpace.SMEM)

    x2_p, z_p, adj_s_p, logits_p = pl.pallas_call(
        _make_kernel(n),
        out_shape=(jax.ShapeDtypeStruct((n_p, out_p), jnp.float32),
                   jax.ShapeDtypeStruct((n_p, hid_p), jnp.float32),
                   jax.ShapeDtypeStruct((n_p, n_p), jnp.float32),
                   jax.ShapeDtypeStruct((n_p, n_p), jnp.float32)),
        in_specs=[smem] + [vmem] * 10,
        out_specs=(vmem, vmem, vmem, vmem),
    )(params["prelu_a"], x_p, adj_p, u, rmask,
      w0_p, b0_p, w1_p, b1_p, gamma_p, beta_p)

    return (x2_p[:n, :out_c], z_p[:n, :hidden],
            adj_s_p[:n, :n], logits_p[:n, :n], adj_orig)


# --------------- pure-JAX reference for the deterministic parts ----------------
def _ref_mm(a, b):
    # Mirrors the kernel's MXU dtype policy (bf16 operands / f32 accumulation)
    # so the check verifies kernel structure independently of that choice.
    return jnp.dot(a.astype(MXU_DTYPE), b.astype(MXU_DTYPE),
                   preferred_element_type=jnp.float32,
                   precision=jax.lax.Precision.HIGHEST)


def _reference_given_sample(params, x, adj_orig, adj_sampled):
    w0, w1 = params["w0"], params["w1"]
    b0, b1 = params["b0"], params["b1"]

    adj_t = adj_orig.T
    deg0 = adj_t.sum(axis=1, keepdims=True) + 1.0
    dinv0 = lax.rsqrt(deg0)
    xw0 = _ref_mm(x, w0)
    v0 = dinv0 * xw0
    z0 = dinv0 * (_ref_mm(adj_t, v0) + v0) + b0
    logits = _ref_mm(z0, z0.T)

    deg1 = adj_sampled.sum(axis=1, keepdims=True)
    dinv1 = lax.rsqrt(deg1)
    v1 = dinv1 * xw0
    x1 = dinv1 * _ref_mm(adj_sampled, v1) + b0
    z = jnp.where(x1 >= 0.0, x1, params["prelu_a"][0, 0] * x1)
    mean = x1.mean(axis=0, keepdims=True)
    diff = x1 - mean
    var = (diff * diff).mean(axis=0, keepdims=True)
    h = jnp.maximum(diff * lax.rsqrt(var + BN_EPS) * params["bn_gamma"]
                    + params["bn_beta"], 0.0)
    v2 = dinv1 * _ref_mm(h, w1)
    x2 = dinv1 * _ref_mm(adj_sampled, v2) + b1
    return x2, z, logits


if __name__ == "__main__":
    N, IN_C, HIDDEN, OUT_C = 16, 8, 32, 16

    key = jax.random.PRNGKey(0)
    k_x, k_p, k_noise = jax.random.split(key, 3)

    x = jax.random.normal(k_x, (N, IN_C), jnp.float32)

    # Deterministic undirected graph: ring edges + "skip-3" chords (both directions).
    src = jnp.arange(N, dtype=jnp.int32)
    ring_dst = (src + 1) % N
    chord_dst = (src + 3) % N
    e_src = jnp.concatenate([src, ring_dst, src, chord_dst])
    e_dst = jnp.concatenate([ring_dst, src, chord_dst, src])
    edge_index = jnp.stack([e_src, e_dst])                 # (2, E), E = 64

    params = init_params(k_p, IN_C, HIDDEN, OUT_C)

    outputs = jax.jit(gcn_aug_forward)(params, x, edge_index, k_noise)
    outputs = jax.block_until_ready(outputs)
    x_out, z_out, adj_sampled, adj_logits, adj_orig = outputs

    assert x_out.shape == (N, OUT_C) and z_out.shape == (N, HIDDEN)
    assert adj_sampled.shape == (N, N) and adj_logits.shape == (N, N)
    assert adj_orig.shape == (N, N)

    # Structural checks on the sampled adjacency (exact by construction).
    assert bool(jnp.all(jnp.diag(adj_sampled) == 1.0))
    assert bool(jnp.all(adj_sampled == adj_sampled.T))
    assert bool(jnp.all((adj_sampled == 0.0) | (adj_sampled == 1.0)))

    # Numerical cross-check of everything deterministic against a pure-JAX
    # reference using the same MXU operand dtype policy.  The Bernoulli draw
    # uses the kernel's own sampled adjacency fed back into the reference
    # (pyro's RNG stream cannot be bit-matched); tolerances cover accumulation
    # order differences between Mosaic and XLA.
    x2_exp, z_exp, logits_exp = _reference_given_sample(
        params, x, adj_orig, adj_sampled)
    assert bool(jnp.allclose(adj_logits, logits_exp, rtol=5e-2, atol=5e-2))
    assert bool(jnp.allclose(z_out, z_exp, rtol=5e-2, atol=5e-2))
    assert bool(jnp.allclose(x_out, x2_exp, rtol=5e-2, atol=5e-2))

    print("KERNEL_OK")
</pallas_src>

<mosaic_0001>
module attributes {stable_mosaic.version = 11 : i64} {
  func.func @kernel(%arg0: memref<1x1xf32, #tpu.memory_space<smem>>, %arg1: memref<128x128xf32, #tpu.memory_space<vmem>>, %arg2: memref<128x128xf32, #tpu.memory_space<vmem>>, %arg3: memref<128x128xf32, #tpu.memory_space<vmem>>, %arg4: memref<128x1xf32, #tpu.memory_space<vmem>>, %arg5: memref<128x128xf32, #tpu.memory_space<vmem>>, %arg6: memref<1x128xf32, #tpu.memory_space<vmem>>, %arg7: memref<128x128xf32, #tpu.memory_space<vmem>>, %arg8: memref<1x128xf32, #tpu.memory_space<vmem>>, %arg9: memref<1x128xf32, #tpu.memory_space<vmem>>, %arg10: memref<1x128xf32, #tpu.memory_space<vmem>>, %arg11: memref<128x128xf32, #tpu.memory_space<vmem>>, %arg12: memref<128x128xf32, #tpu.memory_space<vmem>>, %arg13: memref<128x128xf32, #tpu.memory_space<vmem>>, %arg14: memref<128x128xf32, #tpu.memory_space<vmem>>) attributes {dimension_semantics = [], scalar_prefetch = 0 : i64, scratch_operands = 0 : i64, tpu.core_type = #tpu.core_type<tc>} {
    %c0 = arith.constant 0 : index
    %c0_0 = arith.constant 0 : index
    %0 = vector.load %arg1[%c0, %c0_0] : memref<128x128xf32, #tpu.memory_space<vmem>>, vector<128x128xf32>
    %c0_1 = arith.constant 0 : index
    %c0_2 = arith.constant 0 : index
    %1 = vector.load %arg2[%c0_1, %c0_2] : memref<128x128xf32, #tpu.memory_space<vmem>>, vector<128x128xf32>
    %c0_3 = arith.constant 0 : index
    %c0_4 = arith.constant 0 : index
    %2 = vector.load %arg4[%c0_3, %c0_4] : memref<128x1xf32, #tpu.memory_space<vmem>>, vector<128x1xf32>
    %c0_5 = arith.constant 0 : index
    %c0_6 = arith.constant 0 : index
    %3 = vector.load %arg6[%c0_5, %c0_6] : memref<1x128xf32, #tpu.memory_space<vmem>>, vector<1x128xf32>
    %c0_7 = arith.constant 0 : index
    %c0_8 = arith.constant 0 : index
    %4 = vector.load %arg5[%c0_7, %c0_8] : memref<128x128xf32, #tpu.memory_space<vmem>>, vector<128x128xf32>
    %5 = arith.truncf %0 : vector<128x128xf32> to vector<128x128xbf16>
    %6 = arith.truncf %4 : vector<128x128xf32> to vector<128x128xbf16>
    %cst = arith.constant dense<0.000000e+00> : vector<128x128xf32>
    %7 = tpu.matmul %5, %6, %cst {dimension_numbers = #tpu.dot_dimension_numbers<[1], [0], [0], [1], [0, 0, 1, 1], [], []>} : vector<128x128xbf16>, vector<128x128xbf16>, vector<128x128xf32> -> vector<128x128xf32>
    %8 = tpu.transpose %1, [1, 0] : vector<128x128xf32> -> vector<128x128xf32>
    %cst_9 = arith.constant dense<0.000000e+00> : vector<128xf32>
    %9 = vector.multi_reduction <add>, %8, %cst_9 [1] : vector<128x128xf32> to vector<128xf32>
    %10 = vector.shape_cast %9 : vector<128xf32> to vector<128x1xf32>
    %cst_10 = arith.constant 1.000000e+00 : f32
    %11 = vector.broadcast %cst_10 : f32 to vector<128x1xf32>
    %12 = arith.addf %10, %11 : vector<128x1xf32>
    %13 = math.rsqrt %12 : vector<128x1xf32>
    %14 = vector.broadcast %13 : vector<128x1xf32> to vector<128x128xf32>
    %15 = arith.mulf %14, %7 : vector<128x128xf32>
    %16 = arith.truncf %8 : vector<128x128xf32> to vector<128x128xbf16>
    %17 = arith.truncf %15 : vector<128x128xf32> to vector<128x128xbf16>
    %cst_11 = arith.constant dense<0.000000e+00> : vector<128x128xf32>
    %18 = tpu.matmul %16, %17, %cst_11 {dimension_numbers = #tpu.dot_dimension_numbers<[1], [0], [0], [1], [0, 0, 1, 1], [], []>} : vector<128x128xbf16>, vector<128x128xbf16>, vector<128x128xf32> -> vector<128x128xf32>
    %19 = arith.addf %18, %15 : vector<128x128xf32>
    %20 = vector.broadcast %13 : vector<128x1xf32> to vector<128x128xf32>
    %21 = arith.mulf %20, %19 : vector<128x128xf32>
    %22 = vector.broadcast %3 : vector<1x128xf32> to vector<128x128xf32>
    %23 = arith.addf %21, %22 : vector<128x128xf32>
    %24 = vector.broadcast %2 : vector<128x1xf32> to vector<128x128xf32>
    %25 = arith.mulf %23, %24 : vector<128x128xf32>
    %26 = arith.truncf %25 : vector<128x128xf32> to vector<128x128xbf16>
    %cst_12 = arith.constant dense<0.000000e+00> : vector<128x128xf32>
    %27 = tpu.matmul %26, %26, %cst_12 {dimension_numbers = #tpu.dot_dimension_numbers<[1], [1], [0], [0], [0, 0, 1, 0], [], []>} : vector<128x128xbf16>, vector<128x128xbf16>, vector<128x128xf32> -> vector<128x128xf32>
    %c0_13 = arith.constant 0 : index
    %c0_14 = arith.constant 0 : index
    %28 = vector.load %arg14[%c0_13, %c0_14] : memref<128x128xf32, #tpu.memory_space<vmem>>, vector<128x128xf32>
    tpu.vector_store %arg14[%c0_13, %c0_14], %27 {strides = array<i32>} : memref<128x128xf32, #tpu.memory_space<vmem>>, vector<128x128xf32>,
    %29 = vector.shape_cast %27 : vector<128x128xf32> to vector<1x128x128xf32>
    %cst_15 = arith.constant dense<0xFF800000> : vector<1xf32>
    %30 = vector.multi_reduction <maximumf>, %29, %cst_15 [1, 2] : vector<1x128x128xf32> to vector<1xf32>
    %31 = vector.shape_cast %30 : vector<1xf32> to vector<1x1x1xf32>
    %32 = vector.extract %31[0, 0, 0] : f32 from vector<1x1x1xf32>
    %cst_16 = arith.constant 1.000000e+00 : f32
    %33 = arith.divf %cst_16, %32 : f32
    %34 = vector.broadcast %33 : f32 to vector<128x128xf32>
    %35 = arith.mulf %27, %34 : vector<128x128xf32>
    %cst_17 = arith.constant 8.000000e-01 : f32
    %36 = vector.broadcast %cst_17 : f32 to vector<128x128xf32>
    %37 = arith.mulf %36, %35 : vector<128x128xf32>
    %cst_18 = arith.constant 2.000000e-01 : f32
    %38 = vector.broadcast %cst_18 : f32 to vector<128x128xf32>
    %39 = arith.mulf %38, %1 : vector<128x128xf32>
    %40 = arith.addf %37, %39 : vector<128x128xf32>
    %cst_19 = arith.constant 0.000000e+00 : f32
    %41 = vector.broadcast %cst_19 : f32 to vector<128x128xf32>
    %42 = arith.maximumf %40, %41 : vector<128x128xf32>
    %43 = tpu.iota {dimensions = array<i32: 0>} : vector<128x128xi32>
    %44 = tpu.iota {dimensions = array<i32: 1>} : vector<128x128xi32>
    %c16_i32 = arith.constant 16 : i32
    %45 = vector.broadcast %c16_i32 : i32 to vector<128x128xi32>
    %46 = arith.cmpi slt, %43, %45 : vector<128x128xi32>
    %c16_i32_20 = arith.constant 16 : i32
    %47 = vector.broadcast %c16_i32_20 : i32 to vector<128x128xi32>
    %48 = arith.cmpi slt, %44, %47 : vector<128x128xi32>
    %49 = arith.andi %46, %48 : vector<128x128xi1>
    %c0_21 = arith.constant 0 : index
    %c0_22 = arith.constant 0 : index
    %50 = vector.load %arg3[%c0_21, %c0_22] : memref<128x128xf32, #tpu.memory_space<vmem>>, vector<128x128xf32>
    %51 = arith.addf %42, %50 : vector<128x128xf32>
    %cst_23 = arith.constant 1.000000e+00 : f32
    %52 = vector.broadcast %cst_23 : f32 to vector<128x128xf32>
    %53 = arith.cmpf oge, %51, %52 : vector<128x128xf32>
    %54 = arith.andi %53, %49 : vector<128x128xi1>
    %cst_24 = arith.constant 1.000000e+00 : f32
    %cst_25 = arith.constant 0.000000e+00 : f32
    %55 = vector.broadcast %cst_24 : f32 to vector<128x128xf32>
    %56 = vector.broadcast %cst_25 : f32 to vector<128x128xf32>
    %57 = arith.select %54, %55, %56 : vector<128x128xi1>, vector<128x128xf32>
    %58 = tpu.transpose %57, [1, 0] : vector<128x128xf32> -> vector<128x128xf32>
    %59 = arith.cmpi eq, %43, %44 : vector<128x128xi32>
    %60 = arith.cmpi sgt, %44, %43 : vector<128x128xi32>
    %61 = arith.select %60, %57, %58 : vector<128x128xi1>, vector<128x128xf32>
    %cst_26 = arith.constant 1.000000e+00 : f32
    %62 = vector.broadcast %cst_26 : f32 to vector<128x128xf32>
    %63 = arith.select %59, %62, %61 : vector<128x128xi1>, vector<128x128xf32>
    %c0_27 = arith.constant 0 : index
    %c0_28 = arith.constant 0 : index
    %64 = vector.load %arg13[%c0_27, %c0_28] : memref<128x128xf32, #tpu.memory_space<vmem>>, vector<128x128xf32>
    tpu.vector_store %arg13[%c0_27, %c0_28], %63 {strides = array<i32>} : memref<128x128xf32, #tpu.memory_space<vmem>>, vector<128x128xf32>,
    %65 = arith.truncf %63 : vector<128x128xf32> to vector<128x128xbf16>
    %cst_29 = arith.constant dense<0.000000e+00> : vector<128xf32>
    %66 = vector.multi_reduction <add>, %63, %cst_29 [1] : vector<128x128xf32> to vector<128xf32>
    %67 = vector.shape_cast %66 : vector<128xf32> to vector<128x1xf32>
    %68 = math.rsqrt %67 : vector<128x1xf32>
    %69 = vector.broadcast %68 : vector<128x1xf32> to vector<128x128xf32>
    %70 = arith.mulf %69, %7 : vector<128x128xf32>
    %71 = arith.truncf %70 : vector<128x128xf32> to vector<128x128xbf16>
    %cst_30 = arith.constant dense<0.000000e+00> : vector<128x128xf32>
    %72 = tpu.matmul %65, %71, %cst_30 {dimension_numbers = #tpu.dot_dimension_numbers<[1], [0], [0], [1], [0, 0, 1, 1], [], []>} : vector<128x128xbf16>, vector<128x128xbf16>, vector<128x128xf32> -> vector<128x128xf32>
    %73 = vector.broadcast %68 : vector<128x1xf32> to vector<128x128xf32>
    %74 = arith.mulf %73, %72 : vector<128x128xf32>
    %75 = vector.broadcast %3 : vector<1x128xf32> to vector<128x128xf32>
    %76 = arith.addf %74, %75 : vector<128x128xf32>
    %77 = vector.broadcast %2 : vector<128x1xf32> to vector<128x128xf32>
    %78 = arith.mulf %76, %77 : vector<128x128xf32>
    %c0_31 = arith.constant 0 : index
    %c0_32 = arith.constant 0 : index
    %79 = memref.load %arg0[%c0_31, %c0_32] : memref<1x1xf32, #tpu.memory_space<smem>>
    %cst_33 = arith.constant 0.000000e+00 : f32
    %80 = vector.broadcast %cst_33 : f32 to vector<128x128xf32>
    %81 = arith.cmpf oge, %78, %80 : vector<128x128xf32>
    %82 = vector.broadcast %79 : f32 to vector<128x128xf32>
    %83 = arith.mulf %82, %78 : vector<128x128xf32>
    %84 = arith.select %81, %78, %83 : vector<128x128xi1>, vector<128x128xf32>
    %c0_34 = arith.constant 0 : index
    %c0_35 = arith.constant 0 : index
    %85 = vector.load %arg12[%c0_34, %c0_35] : memref<128x128xf32, #tpu.memory_space<vmem>>, vector<128x128xf32>
    tpu.vector_store %arg12[%c0_34, %c0_35], %84 {strides = array<i32>} : memref<128x128xf32, #tpu.memory_space<vmem>>, vector<128x128xf32>,
    %cst_36 = arith.constant dense<0.000000e+00> : vector<128xf32>
    %86 = vector.multi_reduction <add>, %78, %cst_36 [0] : vector<128x128xf32> to vector<128xf32>
    %87 = vector.shape_cast %86 : vector<128xf32> to vector<1x128xf32>
    %cst_37 = arith.constant 6.250000e-02 : f32
    %88 = vector.broadcast %cst_37 : f32 to vector<1x128xf32>
    %89 = arith.mulf %87, %88 : vector<1x128xf32>
    %90 = vector.broadcast %89 : vector<1x128xf32> to vector<128x128xf32>
    %91 = arith.subf %78, %90 : vector<128x128xf32>
    %92 = arith.mulf %91, %91 : vector<128x128xf32>
    %93 = vector.broadcast %2 : vector<128x1xf32> to vector<128x128xf32>
    %94 = arith.mulf %92, %93 : vector<128x128xf32>
    %cst_38 = arith.constant dense<0.000000e+00> : vector<128xf32>
    %95 = vector.multi_reduction <add>, %94, %cst_38 [0] : vector<128x128xf32> to vector<128xf32>
    %96 = vector.shape_cast %95 : vector<128xf32> to vector<1x128xf32>
    %cst_39 = arith.constant 6.250000e-02 : f32
    %97 = vector.broadcast %cst_39 : f32 to vector<1x128xf32>
    %98 = arith.mulf %96, %97 : vector<1x128xf32>
    %cst_40 = arith.constant 9.99999974E-6 : f32
    %99 = vector.broadcast %cst_40 : f32 to vector<1x128xf32>
    %100 = arith.addf %98, %99 : vector<1x128xf32>
    %101 = math.rsqrt %100 : vector<1x128xf32>
    %102 = vector.broadcast %101 : vector<1x128xf32> to vector<128x128xf32>
    %103 = arith.mulf %91, %102 : vector<128x128xf32>
    %c0_41 = arith.constant 0 : index
    %c0_42 = arith.constant 0 : index
    %104 = vector.load %arg9[%c0_41, %c0_42] : memref<1x128xf32, #tpu.memory_space<vmem>>, vector<1x128xf32>
    %105 = vector.broadcast %104 : vector<1x128xf32> to vector<128x128xf32>
    %106 = arith.mulf %103, %105 : vector<128x128xf32>
    %c0_43 = arith.constant 0 : index
    %c0_44 = arith.constant 0 : index
    %107 = vector.load %arg10[%c0_43, %c0_44] : memref<1x128xf32, #tpu.memory_space<vmem>>, vector<1x128xf32>
    %108 = vector.broadcast %107 : vector<1x128xf32> to vector<128x128xf32>
    %109 = arith.addf %106, %108 : vector<128x128xf32>
    %cst_45 = arith.constant 0.000000e+00 : f32
    %110 = vector.broadcast %cst_45 : f32 to vector<128x128xf32>
    %111 = arith.maximumf %109, %110 : vector<128x128xf32>
    %112 = vector.broadcast %2 : vector<128x1xf32> to vector<128x128xf32>
    %113 = arith.mulf %111, %112 : vector<128x128xf32>
    %c0_46 = arith.constant 0 : index
    %c0_47 = arith.constant 0 : index
    %114 = vector.load %arg7[%c0_46, %c0_47] : memref<128x128xf32, #tpu.memory_space<vmem>>, vector<128x128xf32>
    %115 = arith.truncf %113 : vector<128x128xf32> to vector<128x128xbf16>
    %116 = arith.truncf %114 : vector<128x128xf32> to vector<128x128xbf16>
    %cst_48 = arith.constant dense<0.000000e+00> : vector<128x128xf32>
    %117 = tpu.matmul %115, %116, %cst_48 {dimension_numbers = #tpu.dot_dimension_numbers<[1], [0], [0], [1], [0, 0, 1, 1], [], []>} : vector<128x128xbf16>, vector<128x128xbf16>, vector<128x128xf32> -> vector<128x128xf32>
    %118 = vector.broadcast %68 : vector<128x1xf32> to vector<128x128xf32>
    %119 = arith.mulf %118, %117 : vector<128x128xf32>
    %120 = arith.truncf %119 : vector<128x128xf32> to vector<128x128xbf16>
    %cst_49 = arith.constant dense<0.000000e+00> : vector<128x128xf32>
    %121 = tpu.matmul %65, %120, %cst_49 {dimension_numbers = #tpu.dot_dimension_numbers<[1], [0], [0], [1], [0, 0, 1, 1], [], []>} : vector<128x128xbf16>, vector<128x128xbf16>, vector<128x128xf32> -> vector<128x128xf32>
    %122 = vector.broadcast %68 : vector<128x1xf32> to vector<128x128xf32>
    %123 = arith.mulf %122, %121 : vector<128x128xf32>
    %c0_50 = arith.constant 0 : index
    %c0_51 = arith.constant 0 : index
    %124 = vector.load %arg8[%c0_50, %c0_51] : memref<1x128xf32, #tpu.memory_space<vmem>>, vector<1x128xf32>
    %125 = vector.broadcast %124 : vector<1x128xf32> to vector<128x128xf32>
    %126 = arith.addf %123, %125 : vector<128x128xf32>
    %c0_52 = arith.constant 0 : index
    %c0_53 = arith.constant 0 : index
    %127 = vector.load %arg11[%c0_52, %c0_53] : memref<128x128xf32, #tpu.memory_space<vmem>>, vector<128x128xf32>
    tpu.vector_store %arg11[%c0_52, %c0_53], %126 {strides = array<i32>} : memref<128x128xf32, #tpu.memory_space<vmem>>, vector<128x128xf32>,
    return
  }
}

</mosaic_0001>

<bundles_post_ra>
// kernel: gcn_aug_forward.1
= control target key start
LH: loop header
LB: loop body
LE: loop exit
PB: predicated region body
PF: predicated region fallthrough
CT: control target
= control target key end

     0   :  { %s3584_s2 = inlined_call_operand.vmem [shape: f32[128,128], index: 2, kind: input, shape index: {}]   ;;  %s3585_s5 = inlined_call_operand.vmem [shape: f32[128,128], index: 5, kind: input, shape index: {}]   ;;  %s3586_s1 = inlined_call_operand.vmem [shape: f32[128,128], index: 1, kind: input, shape index: {}]   ;;  %s3587_s4 = inlined_call_operand.vmem [shape: f32[128,1], index: 4, kind: input, shape index: {}]   ;;  %s3588_s6 = inlined_call_operand.vmem [shape: f32[1,128], index: 6, kind: input, shape index: {}]   ;;  %s3589_s14 = inlined_call_operand.vmem [shape: f32[128,128], index: 14, kind: output, shape index: {3}]   ;;  %s3590_s3 = inlined_call_operand.vmem [shape: f32[128,128], index: 3, kind: input, shape index: {}]   ;;  %s3591_s13 = inlined_call_operand.vmem [shape: f32[128,128], index: 13, kind: output, shape index: {2}]   ;;  %s3592_s7 = inlined_call_operand.vmem [shape: f32[128,128], index: 7, kind: input, shape index: {}]   ;;  %s3593_s0 = inlined_call_operand.<no memory space> [shape: f32[1,1], index: 0, kind: input, shape index: {}]   ;;  %s3594_s12 = inlined_call_operand.vmem [shape: f32[128,128], index: 12, kind: output, shape index: {1}]   ;;  %s3595_s9 = inlined_call_operand.vmem [shape: f32[1,128], index: 9, kind: input, shape index: {}]   ;;  %s3596_s10 = inlined_call_operand.vmem [shape: f32[1,128], index: 10, kind: input, shape index: {}]   ;;  %s3597_s8 = inlined_call_operand.vmem [shape: f32[1,128], index: 8, kind: input, shape index: {}]   ;;  %s3598_s11 = inlined_call_operand.vmem [shape: f32[128,128], index: 11, kind: output, shape index: {0}]  }
   0x1   :  { %v2319_v0 = vld [vmem:[%s3584_s2] sm:$0xff]  ;;  %v2325_v1 = vld [vmem:[%s3584_s2 + $0x8] sm:$0xff]  ;;  %v95_v4 = vld [vmem:[%s3585_s5 + $0x10] sm:$0xff] }
   0x2   :  { %222 = vxpose.xlu0.b32.start [1/16] %v2319_v0, 128  ;;  %v93_v2 = vld [vmem:[%s3585_s5] sm:$0xff]  ;;  %v94_v3 = vld [vmem:[%s3585_s5 + $0x8] sm:$0xff]  ;;  %v96_v6 = vld [vmem:[%s3585_s5 + $0x18] sm:$0xff] }
   0x3   :  { %v117_v5 = vpack.c.bf16 %v94_v3, %v93_v2  ;;  %v62_v7 = vld [vmem:[%s3584_s2 + $0x10] sm:$0xff]  ;;  %v118_v8 = vpack.c.bf16 %v96_v6, %v95_v4  ;;  %v97_v9 = vld [vmem:[%s3585_s5 + $0x20] sm:$0xff]  ;;  %v98_v10 = vld [vmem:[%s3585_s5 + $0x28] sm:$0xff] }
   0x4   :  { %v119_v11 = vpack.c.bf16 %v98_v10, %v97_v9  ;;  %v63_v12 = vld [vmem:[%s3584_s2 + $0x18] sm:$0xff]  ;;  %v99_v13 = vld [vmem:[%s3585_s5 + $0x30] sm:$0xff]  ;;  %v44_v15 = vld [vmem:[%s3586_s1] sm:$0xff] }
   0x5   :  { %1954 = vmatprep.subr.bf16.mxu0 %v117_v5  ;;  %v100_v14 = vld [vmem:[%s3585_s5 + $0x38] sm:$0xff]  ;;  %v45_v16 = vld [vmem:[%s3586_s1 + $0x8] sm:$0xff]  ;;  %v64_v19 = vld [vmem:[%s3584_s2 + $0x20] sm:$0xff] }
   0x6   :  { %223 = vxpose.xlu0.b32.cont [2/16] %v2325_v1, 128  ;;  %1955 = vmatpush3.bf16.msra.mxu0 %v117_v5  ;;  %v109_v17 = vpack.c.bf16 %v45_v16, %v44_v15  ;;  %v120_v18 = vpack.c.bf16 %v100_v14, %v99_v13  ;;  %v101_v20 = vld [vmem:[%s3585_s5 + $0x40] sm:$0xff]  ;;  %v102_v21 = vld [vmem:[%s3585_s5 + $0x48] sm:$0xff]  ;;  %v103_v24 = vld [vmem:[%s3585_s5 + $0x50] sm:$0xff] }
   0x7   :  { %1956 = vmatprep.subr.bf16.mxu0 %v118_v8  ;;  %v121_v22 = vpack.c.bf16 %v102_v21, %v101_v20  ;;  %v65_v23 = vld [vmem:[%s3584_s2 + $0x28] sm:$0xff]  ;;  %v104_v25 = vld [vmem:[%s3585_s5 + $0x58] sm:$0xff]  ;;  %v66_v27 = vld [vmem:[%s3584_s2 + $0x30] sm:$0xff] }
   0x8   :  { %1970 = vmatprep.mubr.bf16.mxu0 %v109_v17  ;;  %v122_v26 = vpack.c.bf16 %v104_v25, %v103_v24  ;;  %v105_v28 = vld [vmem:[%s3585_s5 + $0x60] sm:$0xff]  ;;  %v106_v29 = vld [vmem:[%s3585_s5 + $0x68] sm:$0xff]  ;;  %v67_v31 = vld [vmem:[%s3584_s2 + $0x38] sm:$0xff] }
   0x9   :  { %v123_v30 = vpack.c.bf16 %v106_v29, %v105_v28  ;;  %v107_v32 = vld [vmem:[%s3585_s5 + $0x70] sm:$0xff]  ;;  %v108_v33 = vld [vmem:[%s3585_s5 + $0x78] sm:$0xff]  ;;  %v68_v35 = vld [vmem:[%s3584_s2 + $0x40] sm:$0xff] }
   0xa   :  { %224 = vxpose.xlu0.b32.cont [3/16] %v62_v7, 128  ;;  %1957 = vmatpush3.bf16.msra.mxu0 %v118_v8  ;;  %v124_v34 = vpack.c.bf16 %v108_v33, %v107_v32  ;;  %v46_v36 = vld [vmem:[%s3586_s1 + $0x10] sm:$0xff]  ;;  %v47_v37 = vld [vmem:[%s3586_s1 + $0x18] sm:$0xff]  ;;  %v48_v38 = vld [vmem:[%s3586_s1 + $0x20] sm:$0xff] }
   0xb   :  { %1958 = vmatprep.subr.bf16.mxu0 %v119_v11  ;;  %v49_v39 = vld [vmem:[%s3586_s1 + $0x28] sm:$0xff]  ;;  %v110_v41 = vpack.c.bf16 %v47_v37, %v46_v36  ;;  %v70_v43 = vld [vmem:[%s3584_s2 + $0x50] sm:$0xff]  ;;  %v51_v45 = vld [vmem:[%s3586_s1 + $0x38] sm:$0xff] }
   0xc   :  { %v69_v40 = vld [vmem:[%s3584_s2 + $0x48] sm:$0xff]  ;;  %v111_v42 = vpack.c.bf16 %v49_v39, %v48_v38  ;;  %v50_v44 = vld [vmem:[%s3586_s1 + $0x30] sm:$0xff]  ;;  %v52_v46 = vld [vmem:[%s3586_s1 + $0x40] sm:$0xff] }
   0xd   :  { %v53_v47 = vld [vmem:[%s3586_s1 + $0x48] sm:$0xff]  ;;  %v71_v48 = vld [vmem:[%s3584_s2 + $0x58] sm:$0xff]  ;;  %v112_v49 = vpack.c.bf16 %v51_v45, %v50_v44  ;;  %v72_v51 = vld [vmem:[%s3584_s2 + $0x60] sm:$0xff] }
   0xe   :  { %225 = vxpose.xlu0.b32.cont [4/16] %v63_v12, 128  ;;  %1959 = vmatpush3.bf16.msra.mxu0 %v119_v11  ;;  %v113_v50 = vpack.c.bf16 %v53_v47, %v52_v46  ;;  %v54_v52 = vld [vmem:[%s3586_s1 + $0x50] sm:$0xff]  ;;  %v55_v53 = vld [vmem:[%s3586_s1 + $0x58] sm:$0xff]  ;;  %v56_v54 = vld [vmem:[%s3586_s1 + $0x60] sm:$0xff] }
   0xf   :  { %1960 = vmatprep.subr.bf16.mxu0 %v120_v18  ;;  %v57_v55 = vld [vmem:[%s3586_s1 + $0x68] sm:$0xff]  ;;  %v114_v57 = vpack.c.bf16 %v55_v53, %v54_v52  ;;  %v74_v59 = vld [vmem:[%s3584_s2 + $0x70] sm:$0xff]  ;;  %v59_v61 = vld [vmem:[%s3586_s1 + $0x78] sm:$0xff] }
  0x10   :  { %v73_v56 = vld [vmem:[%s3584_s2 + $0x68] sm:$0xff]  ;;  %v115_v58 = vpack.c.bf16 %v57_v55, %v56_v54  ;;  %v58_v60 = vld [vmem:[%s3586_s1 + $0x70] sm:$0xff]  ;;  %v75_v62 = vld [vmem:[%s3584_s2 + $0x78] sm:$0xff] }
  0x11   :  { %v116_v63 = vpack.c.bf16 %v59_v61, %v58_v60  ;;  %v84_v33 = vld [vmem:[%s3587_s4 + $0x40] sm:$0xff]  ;;  %v86_v36 = vld [vmem:[%s3587_s4 + $0x50] sm:$0xff]  ;;  %v87_v61 = vld [vmem:[%s3587_s4 + $0x58] sm:$0xff] }
  0x12   :  { %226 = vxpose.xlu0.b32.cont [5/16] %v64_v19, 128  ;;  %1961 = vmatpush3.bf16.msra.mxu0 %v120_v18  ;;  %v80_v39 = vld [vmem:[%s3587_s4 + $0x20] sm:$0xff]  ;;  %v90_v44 = vld [vmem:[%s3587_s4 + $0x70] sm:$0xff] }
  0x13   :  { %1962 = vmatprep.subr.bf16.mxu0 %v121_v22  ;;  %v82_v47 = vld [vmem:[%s3587_s4 + $0x30] sm:$0xff] }
  0x16   :  { %227 = vxpose.xlu0.b32.cont [6/16] %v65_v23, 128  ;;  %1963 = vmatpush3.bf16.msra.mxu0 %v121_v22 }
  0x17   :  { %1964 = vmatprep.subr.bf16.mxu0 %v122_v26 }
  0x1a   :  { %228 = vxpose.xlu0.b32.cont [7/16] %v66_v27, 128  ;;  %1965 = vmatpush3.bf16.msra.mxu0 %v122_v26  ;;  %v2239_v26 = vmov 0   ;;  %v77_v27 = vld [vmem:[%s3587_s4 + $0x8] sm:$0xff] }
  0x1b   :  { %1966 = vmatprep.subr.bf16.mxu0 %v123_v30  ;;  %2169 = vset.pattern.permute.xlu1 %v2239_v26 }
  0x1e   :  { %229 = vxpose.xlu0.b32.cont [8/16] %v67_v31, 128  ;;  %1967 = vmatpush3.bf16.msra.mxu0 %v123_v30  ;;  %v78_v30 = vld [vmem:[%s3587_s4 + $0x10] sm:$0xff]  ;;  %v76_v31 = vld [vmem:[%s3587_s4] sm:$0xff] }
  0x1f   :  { %1968 = vmatprep.subr.bf16.mxu0 %v124_v34 }
  0x22   :  { %230 = vxpose.xlu0.b32.cont [9/16] %v68_v35, 128  ;;  %1969 = vmatpush3.bf16.msra.mxu0 %v124_v34  ;;  %v79_v34 = vld [vmem:[%s3587_s4 + $0x18] sm:$0xff] }
  0x25   :  { %1971 = vmatmul.mubr.bf16.vlgmr.msra.gmra.mrb[0].mxu0 %v110_v41  ;;  %v88_v41 = vld [vmem:[%s3587_s4 + $0x60] sm:$0xff] }
  0x26   :  { %231 = vxpose.xlu0.b32.cont [10/16] %v69_v40, 128  ;;  %1974 = vmatprep.mubr.bf16.mxu0 %v111_v42  ;;  %v81_v42 = vld [vmem:[%s3587_s4 + $0x28] sm:$0xff] }
  0x2a   :  { %232 = vxpose.xlu0.b32.cont [11/16] %v70_v43, 128 }
  0x2d   :  { %1975 = vmatmul.mubr.bf16.gmra.mrb[4].mxu0 %v112_v49 }
  0x2e   :  { %233 = vxpose.xlu0.b32.cont [12/16] %v71_v48, 128  ;;  %1978 = vmatprep.mubr.bf16.mxu0 %v113_v50 }
  0x32   :  { %234 = vxpose.xlu0.b32.cont [13/16] %v72_v51, 128  ;;  %v83_v51 = vld [vmem:[%s3587_s4 + $0x38] sm:$0xff] }
  0x35   :  { %1979 = vmatmul.mubr.bf16.gmra.mrb[8].mxu0 %v114_v57  ;;  %v85_v57 = vld [vmem:[%s3587_s4 + $0x48] sm:$0xff] }
  0x36   :  { %235 = vxpose.xlu0.b32.cont [14/16] %v73_v56, 128  ;;  %1982 = vmatprep.mubr.bf16.mxu0 %v115_v58 }
  0x3a   :  { %236 = vxpose.xlu0.b32.cont [15/16] %v74_v59, 128 }
  0x3d   :  { %1983 = vmatmul.mubr.bf16.gmra.mrb[12].mxu0 %v116_v63 }
  0x3e   :  { %237 = vxpose.xlu0.b32.end [16/16] %v75_v62, 128 }
  0x67   :  { %2168 = vset.pattern.permute.xlu0 %v2239_v26 }
  0x68   :  { %487 = vperm.xlu0 %2168, %v76_v31  }
  0x6c   :  { %527 = vperm.xlu0 %2168, %v84_v33  }
  0x70   :  { %537 = vperm.xlu0 %2168, %v86_v36  }
  0x74   :  { %547 = vperm.xlu0 %2168, %v88_v41  }
  0x78   :  { %557 = vperm.xlu0 %2168, %v90_v44  }
  0x82   :  { %v238_v2 = vpop.trf.xlu0 }
  0x83   :  { %254 = vadd.xlane.f32.xlu1 %v238_v2 }
  0x86   :  { %v239_v3 = vpop.trf.xlu0 }
  0x87   :  { %256 = vadd.xlane.f32.xlu1 %v239_v3  ;;  %v334_v4 = vpack.c.bf16 %v239_v3, %v238_v2  ;;  %v89_v2 = vld [vmem:[%s3587_s4 + $0x68] sm:$0xff] }
  0x89   :  { %2002 = vmatprep.mubr.bf16.mxu1 %v334_v4 }
  0x8a   :  { %v2466_v5 = vpop.trf.xlu0 }
  0x8b   :  { %258 = vadd.xlane.f32.xlu1 %v2466_v5 }
  0x8e   :  { %v2469_v6 = vpop.trf.xlu0 }
  0x8f   :  { %260 = vadd.xlane.f32.xlu1 %v2469_v6 }
  0x92   :  { %v2474_v8 = vpop.trf.xlu0 }
  0x93   :  { %262 = vadd.xlane.f32.xlu1 %v2474_v8 }
  0x96   :  { %v2477_v9 = vpop.trf.xlu0 }
  0x97   :  { %264 = vadd.xlane.f32.xlu1 %v2477_v9 }
  0x9a   :  { %v2482_v11 = vpop.trf.xlu0 }
  0x9b   :  { %266 = vadd.xlane.f32.xlu1 %v2482_v11 }
  0x9e   :  { %v2485_v12 = vpop.trf.xlu0 }
  0x9f   :  { %268 = vadd.xlane.f32.xlu1 %v2485_v12 }
  0xa2   :  { %v2490_v14 = vpop.trf.xlu0 }
  0xa3   :  { %270 = vadd.xlane.f32.xlu1 %v2490_v14 }
  0xa6   :  { %v2493_v15 = vpop.trf.xlu0 }
  0xa7   :  { %272 = vadd.xlane.f32.xlu1 %v2493_v15 }
  0xaa   :  { %v2498_v17 = vpop.trf.xlu0 }
  0xab   :  { %274 = vadd.xlane.f32.xlu1 %v2498_v17 }
  0xae   :  { %v2501_v18 = vpop.trf.xlu0 }
  0xaf   :  { %276 = vadd.xlane.f32.xlu1 %v2501_v18 }
  0xb2   :  { %v2506_v20 = vpop.trf.xlu0 }
  0xb3   :  { %278 = vadd.xlane.f32.xlu1 %v2506_v20 }
  0xb6   :  { %v2509_v21 = vpop.trf.xlu0 }
  0xb7   :  { %280 = vadd.xlane.f32.xlu1 %v2509_v21 }
  0xba   :  { %v2514_v23 = vpop.trf.xlu0 }
  0xbb   :  { %282 = vadd.xlane.f32.xlu1 %v2514_v23 }
  0xbe   :  { %v2517_v24 = vpop.trf.xlu0 }
  0xbf   :  { %284 = vadd.xlane.f32.xlu1 %v2517_v24 }
  0xd0   :  { %492 = vperm.xlu1 %2169, %v77_v27  }
  0xd4   :  { %497 = vperm.xlu1 %2169, %v78_v30   ;;  %v91_v30 = vld [vmem:[%s3587_s4 + $0x78] sm:$0xff] }
  0xd8   :  { %502 = vperm.xlu1 %2169, %v79_v34  }
  0xdc   :  { %507 = vperm.xlu1 %2169, %v80_v39  }
  0xe0   :  { %512 = vperm.xlu1 %2169, %v81_v42  }
  0xe4   :  { %517 = vperm.xlu1 %2169, %v82_v47  }
  0xe8   :  { %522 = vperm.xlu1 %2169, %v83_v51  }
  0xec   :  { %532 = vperm.xlu1 %2169, %v85_v57  }
  0xf0   :  { %542 = vperm.xlu1 %2169, %v87_v61  }
  0xf4   :  { %552 = vperm.xlu1 %2169, %v89_v2  }
  0xf8   :  { %v2520_v25 = vpop.f32.mrb[0].mxu0  ;;  %562 = vperm.xlu1 %2169, %v91_v30  }
  0xf9   :  { %v2525_v28 = vpop.f32.mrb[1].mxu0 }
  0xfa   :  { %v2527_v29 = vpop.f32.mrb[2].mxu0 }
  0xfb   :  { %v2535_v32 = vpop.f32.mrb[3].mxu0 }
 0x100   :  { %v2543_v35 = vpop.f32.mrb[4].mxu0 }
 0x101   :  { %v2548_v37 = vpop.f32.mrb[5].mxu0 }
 0x102   :  { %v2550_v38 = vpop.f32.mrb[6].mxu0 }
 0x103   :  { %v2555_v40 = vpop.f32.mrb[7].mxu0 }
 0x108   :  { %v2563_v43 = vpop.f32.mrb[8].mxu0 }
 0x109   :  { %3621 = vst [vmem:[#allocation3_spill] sm:$0xff] %v2563_v43  ;;  %v2568_v45 = vpop.f32.mrb[9].mxu0 }
 0x10a   :  { %v2570_v46 = vpop.f32.mrb[10].mxu0 }
 0x10b   :  { %3622 = vst [vmem:[#allocation4_spill] sm:$0xff] %v2570_v46  ;;  %v2575_v48 = vpop.f32.mrb[11].mxu0 }
 0x110   :  { %v255_v49 = vpop.xlane.xlu1 %254  ;;  %v2580_v52 = vpop.f32.mrb[12].mxu0 }
 0x111   :  { %v286_v50 = vadd.f32 1.0, %v255_v49  ;;  %3623 = vst [vmem:[#allocation5_spill] sm:$0xff] %v2580_v52  ;;  %v2582_v54 = vpop.f32.mrb[13].mxu0 }
 0x112   :  { %3624 = vst [vmem:[#allocation6_spill] sm:$0xff] %v2582_v54  ;;  %v2584_v56 = vpop.f32.mrb[14].mxu0 }
 0x113   :  { %2170 = vrsqrt.f32 %v286_v50  ;;  %3625 = vst [vmem:[#allocation7_spill] sm:$0xff] %v2584_v56  ;;  %v2589_v58 = vpop.f32.mrb[15].mxu0 }
 0x114   :  { %v257_v53 = vpop.xlane.xlu1 %256  ;;  %3626 = vst [vmem:[#allocation8_spill] sm:$0xff] %v2589_v58 }
 0x115   :  { %v287_v55 = vadd.f32 1.0, %v257_v53 }
 0x117   :  { %2172 = vrsqrt.f32 %v287_v55 }
 0x118   :  { %v259_v59 = vpop.xlane.xlu1 %258 }
 0x119   :  { %v288_v60 = vadd.f32 1.0, %v259_v59 }
 0x11b   :  { %2174 = vrsqrt.f32 %v288_v60 }
 0x11c   :  { %v261_v62 = vpop.xlane.xlu1 %260 }
 0x11d   :  { %v289_v63 = vadd.f32 1.0, %v261_v62  ;;  %v2597_v3 = vpop.eup %2170 }
 0x11e   :  { %v2606_v31 = vmul.f32 %v2597_v3, %v2525_v28 }
 0x11f   :  { %2176 = vrsqrt.f32 %v289_v63 }
 0x120   :  { %v263_v4 = vpop.xlane.xlu1 %262 }
 0x121   :  { %v2599_v26 = vpop.eup %2172  ;;  %v290_v27 = vadd.f32 1.0, %v263_v4 }
 0x122   :  { %v2610_v33 = vmul.f32 %v2599_v26, %v2535_v32 }
 0x123   :  { %2178 = vrsqrt.f32 %v290_v27 }
 0x124   :  { %v265_v34 = vpop.xlane.xlu1 %264  ;;  %v342_v36 = vpack.c.bf16 %v2610_v33, %v2606_v31 }
 0x125   :  { %v291_v39 = vadd.f32 1.0, %v265_v34  ;;  %v2614_v41 = vpop.eup %2174 }
 0x126   :  { %1986 = vmatprep.subr.bf16.mxu1 %v342_v36  ;;  %v2620_v49 = vmul.f32 %v2614_v41, %v2520_v25 }
 0x127   :  { %2180 = vrsqrt.f32 %v291_v39  ;;  %1987 = vmatpush3.bf16.msra.mxu1 %v342_v36 }
 0x128   :  { %v267_v42 = vpop.xlane.xlu1 %266 }
 0x129   :  { %v2616_v44 = vpop.eup %2176  ;;  %v292_v47 = vadd.f32 1.0, %v267_v42 }
 0x12a   :  { %v2624_v50 = vmul.f32 %v2616_v44, %v2527_v29 }
 0x12b   :  { %2182 = vrsqrt.f32 %v292_v47 }
 0x12c   :  { %v343_v51 = vpack.c.bf16 %v2624_v50, %v2620_v49  ;;  %v269_v53 = vpop.xlane.xlu1 %268 }
 0x12d   :  { %v293_v55 = vadd.f32 1.0, %v269_v53  ;;  %v2628_v57 = vpop.eup %2178 }
 0x12e   :  { %1988 = vmatprep.subr.bf16.mxu1 %v343_v51  ;;  %v2634_v62 = vmul.f32 %v2628_v57, %v2548_v37 }
 0x12f   :  { %2184 = vrsqrt.f32 %v293_v55  ;;  %1989 = vmatpush3.bf16.msra.mxu1 %v343_v51 }
 0x130   :  { %v271_v59 = vpop.xlane.xlu1 %270 }
 0x131   :  { %v2630_v60 = vpop.eup %2180  ;;  %v294_v61 = vadd.f32 1.0, %v271_v59 }
 0x132   :  { %v2638_v63 = vmul.f32 %v2630_v60, %v2555_v40 }
 0x133   :  { %2186 = vrsqrt.f32 %v294_v61 }
 0x134   :  { %v344_v2 = vpack.c.bf16 %v2638_v63, %v2634_v62  ;;  %v273_v4 = vpop.xlane.xlu1 %272 }
 0x135   :  { %v295_v27 = vadd.f32 1.0, %v273_v4  ;;  %v2642_v30 = vpop.eup %2182 }
 0x136   :  { %1990 = vmatprep.subr.bf16.mxu1 %v344_v2  ;;  %v2648_v42 = vmul.f32 %v2642_v30, %v2543_v35 }
 0x137   :  { %2188 = vrsqrt.f32 %v295_v27  ;;  %1991 = vmatpush3.bf16.msra.mxu1 %v344_v2 }
 0x138   :  { %v275_v34 = vpop.xlane.xlu1 %274 }
 0x139   :  { %v2644_v36 = vpop.eup %2184  ;;  %v296_v39 = vadd.f32 1.0, %v275_v34 }
 0x13a   :  { %v2652_v47 = vmul.f32 %v2644_v36, %v2550_v38 }
 0x13b   :  { %2190 = vrsqrt.f32 %v296_v39 }
 0x13c   :  { %v345_v51 = vpack.c.bf16 %v2652_v47, %v2648_v42  ;;  %v277_v53 = vpop.xlane.xlu1 %276 }
 0x13d   :  { %v297_v55 = vadd.f32 1.0, %v277_v53  ;;  %v2656_v59 = vpop.eup %2186 }
 0x13e   :  { %1992 = vmatprep.subr.bf16.mxu1 %v345_v51  ;;  %v2662_v27 = vmul.f32 %v2656_v59, %v2568_v45 }
 0x13f   :  { %2192 = vrsqrt.f32 %v297_v55  ;;  %1993 = vmatpush3.bf16.msra.mxu1 %v345_v51 }
 0x140   :  { %v279_v61 = vpop.xlane.xlu1 %278 }
 0x141   :  { %v2658_v2 = vpop.eup %2188  ;;  %v298_v4 = vadd.f32 1.0, %v279_v61 }
 0x142   :  { %v2666_v34 = vmul.f32 %v2658_v2, %v2575_v48 }
 0x143   :  { %2194 = vrsqrt.f32 %v298_v4 }
 0x144   :  { %v346_v39 = vpack.c.bf16 %v2666_v34, %v2662_v27  ;;  %v281_v53 = vpop.xlane.xlu1 %280 }
 0x145   :  { %v299_v22 = vadd.f32 1.0, %v281_v53  ;;  %v2670_v51 = vpop.eup %2190 }
 0x146   :  { %1994 = vmatprep.subr.bf16.mxu1 %v346_v39  ;;  %v2676_v16 = vmul.f32 %v2670_v51, %v2563_v43  ;;  %v3631_v43 = vpack.c.bf16 %v2501_v18, %v2498_v17 }
 0x147   :  { %2196 = vrsqrt.f32 %v299_v22  ;;  %1995 = vmatpush3.bf16.msra.mxu1 %v346_v39 }
 0x148   :  { %v283_v55 = vpop.xlane.xlu1 %282 }
 0x149   :  { %v2672_v61 = vpop.eup %2192  ;;  %v300_v19 = vadd.f32 1.0, %v283_v55 }
 0x14a   :  { %v2680_v13 = vmul.f32 %v2672_v61, %v2570_v46 }
 0x14b   :  { %2198 = vrsqrt.f32 %v300_v19 }
 0x14c   :  { %v347_v4 = vpack.c.bf16 %v2680_v13, %v2676_v16  ;;  %v285_v53 = vpop.xlane.xlu1 %284 }
 0x14d   :  { %v301_v10 = vadd.f32 1.0, %v285_v53  ;;  %v2684_v22 = vpop.eup %2194 }
 0x14e   :  { %1996 = vmatprep.subr.bf16.mxu1 %v347_v4  ;;  %v2690_v55 = vmul.f32 %v2684_v22, %v2582_v54  ;;  %v3627_v54 = vpack.c.bf16 %v2469_v6, %v2466_v5  ;;  %v3632_v5 = vpack.c.bf16 %v2509_v21, %v2506_v20  ;;  %v341_v6 = vpack.c.bf16 %v2517_v24, %v2514_v23  ;;  %v2748_v21 = vld [vmem:[%s3588_s6] ss:$0 sm:$0xff] }
 0x14f   :  { %2200 = vrsqrt.f32 %v301_v10  ;;  %1997 = vmatpush3.bf16.msra.mxu1 %v347_v4 }
 0x151   :  { %v2686_v39 = vpop.eup %2196 }
 0x152   :  { %v2694_v7 = vmul.f32 %v2686_v39, %v2589_v58 }
 0x154   :  { %v348_v46 = vpack.c.bf16 %v2694_v7, %v2690_v55 }
 0x155   :  { %v2698_v19 = vpop.eup %2198 }
 0x156   :  { %1998 = vmatprep.subr.bf16.mxu1 %v348_v46  ;;  %v2704_v10 = vmul.f32 %v2698_v19, %v2580_v52  ;;  %v3629_v52 = vpack.c.bf16 %v2485_v12, %v2482_v11 }
 0x157   :  { %1999 = vmatpush3.bf16.msra.mxu1 %v348_v46  ;;  %v3628_v46 = vpack.c.bf16 %v2477_v9, %v2474_v8  ;;  %v2732_v8 = vpop.permute.xlu1 %492 }
 0x159   :  { %v2700_v53 = vpop.eup %2200 }
 0x15a   :  { %v2708_v4 = vmul.f32 %v2700_v53, %v2584_v56  ;;  %v3630_v56 = vpack.c.bf16 %v2493_v15, %v2490_v14 }
 0x15b   :  { %v2734_v9 = vpop.permute.xlu1 %497 }
 0x15c   :  { %v349_v58 = vpack.c.bf16 %v2708_v4, %v2704_v10 }
 0x15e   :  { %2000 = vmatprep.subr.bf16.mxu1 %v349_v58 }
 0x15f   :  { %2001 = vmatpush3.bf16.msra.mxu1 %v349_v58  ;;  %v2736_v11 = vpop.permute.xlu1 %502 }
 0x162   :  { %2003 = vmatmul.mubr.bf16.vlgmr.msra.gmra.mrb[0].mxu1 %v3627_v54 }
 0x163   :  { %2006 = vmatprep.mubr.bf16.mxu1 %v3628_v46  ;;  %v2738_v12 = vpop.permute.xlu1 %507 }
 0x167   :  { %v2740_v14 = vpop.permute.xlu1 %512 }
 0x16a   :  { %2007 = vmatmul.mubr.bf16.gmra.mrb[4].mxu1 %v3629_v52 }
 0x16b   :  { %2010 = vmatprep.mubr.bf16.mxu1 %v3630_v56  ;;  %v2743_v20 = vpop.permute.xlu1 %517 }
 0x172   :  { %2011 = vmatmul.mubr.bf16.gmra.mrb[8].mxu1 %v3631_v43 }
 0x173   :  { %2014 = vmatprep.mubr.bf16.mxu1 %v3632_v5 }
 0x17a   :  { %2015 = vmatmul.mubr.bf16.gmra.mrb[12].mxu1 %v341_v6 }
 0x235   :  { %v2004_v15 = vpop.f32.mrb[0].mxu1 }
 0x236   :  { %v393_v17 = vadd.f32 %v2004_v15, %v2620_v49  ;;  %v384_v18 = vpop.f32.mrb[1].mxu1  ;;  %v2759_v15 = vpop.permute.xlu0 %487 }
 0x237   :  { %v385_v23 = vadd.f32 %v384_v18, %v2606_v31  ;;  %v2005_v24 = vpop.f32.mrb[2].mxu1 }
 0x238   :  { %v449_v43 = vmul.f32 %v2614_v41, %v393_v17  ;;  %v396_v52 = vadd.f32 %v2005_v24, %v2624_v50  ;;  %v387_v54 = vpop.f32.mrb[3].mxu1  ;;  %v2762_v41 = vpop.permute.xlu1 %522 }
 0x239   :  { %v447_v56 = vmul.f32 %v2597_v3, %v385_v23  ;;  %v388_v58 = vadd.f32 %v387_v54, %v2610_v33 }
 0x23a   :  { %v471_v49 = vadd.f32 %v2748_v21, %v449_v43  ;;  %v450_v46 = vmul.f32 %v2616_v44, %v396_v52 }
 0x23b   :  { %v469_v5 = vadd.f32 %v2748_v21, %v447_v56  ;;  %v448_v6 = vmul.f32 %v2599_v26, %v388_v58 }
 0x23c   :  { %v472_v31 = vadd.f32 %v2748_v21, %v450_v46  ;;  %v567_v18 = vmul.f32 %v2734_v9, %v471_v49 }
 0x23d   :  { %v470_v50 = vadd.f32 %v2748_v21, %v448_v6  ;;  %v2008_v17 = vpop.f32.mrb[4].mxu1  ;;  %v565_v26 = vmul.f32 %v2759_v15, %v469_v5  ;;  %v2777_v6 = vpop.permute.xlu0 %527 }
 0x23e   :  { %v409_v3 = vadd.f32 %v2008_v17, %v2648_v42  ;;  %v400_v33 = vpop.f32.mrb[5].mxu1  ;;  %v568_v44 = vmul.f32 %v2736_v11, %v472_v31  ;;  %v2781_v31 = vpop.permute.xlu1 %532 }
 0x23f   :  { %v401_v23 = vadd.f32 %v400_v33, %v2634_v62  ;;  %v2009_v24 = vpop.f32.mrb[6].mxu1  ;;  %v566_v43 = vmul.f32 %v2732_v8, %v470_v50 }
 0x240   :  { %v453_v52 = vmul.f32 %v2642_v30, %v409_v3  ;;  %v412_v54 = vadd.f32 %v2009_v24, %v2652_v47  ;;  %v403_v56 = vpop.f32.mrb[7].mxu1  ;;  %v2773_v58 = vpack.c.bf16 %v568_v44, %v567_v18 }
 0x241   :  { %v451_v42 = vmul.f32 %v2628_v57, %v401_v23  ;;  %v404_v49 = vadd.f32 %v403_v56, %v2638_v63  ;;  %v581_v46 = vpack.c.bf16 %v566_v43, %v565_v26  ;;  %v2794_v24 = vpop.permute.xlu0 %537 }
 0x242   :  { %v475_v62 = vadd.f32 %v2748_v21, %v453_v52  ;;  %v454_v5 = vmul.f32 %v2644_v36, %v412_v54  ;;  %v2798_v54 = vpop.permute.xlu1 %542 }
 0x243   :  { %v473_v30 = vadd.f32 %v2748_v21, %v451_v42  ;;  %v452_v47 = vmul.f32 %v2630_v60, %v404_v49  ;;  %2018 = vmatprep.subr.bf16.mxu0 %v581_v46  ;;  %2034 = vmatprep.mubr.bf16.mxu0 %v581_v46 }
 0x244   :  { %v476_v50 = vadd.f32 %v2748_v21, %v454_v5  ;;  %2019 = vmatpush3.bf16.xpose.msra.mxu0 %v581_v46  ;;  %v571_v36 = vmul.f32 %v2743_v20, %v475_v62 }
 0x245   :  { %v474_v57 = vadd.f32 %v2748_v21, %v452_v47  ;;  %v2012_v63 = vpop.f32.mrb[8].mxu1  ;;  %2020 = vmatprep.subr.bf16.mxu0 %v2773_v58  ;;  %v569_v44 = vmul.f32 %v2738_v12, %v473_v30 }
 0x246   :  { %v425_v17 = vadd.f32 %v2012_v63, %v2676_v16  ;;  %v416_v3 = vpop.f32.mrb[9].mxu1  ;;  %v572_v33 = vmul.f32 %v2762_v41, %v476_v50 }
 0x247   :  { %v417_v18 = vadd.f32 %v416_v3, %v2662_v27  ;;  %v2013_v60 = vpop.f32.mrb[10].mxu1  ;;  %v570_v23 = vmul.f32 %v2740_v14, %v474_v57  ;;  %v2814_v57 = vpop.permute.xlu1 %552 }
 0x248   :  { %v457_v26 = vmul.f32 %v2670_v51, %v425_v17  ;;  %v428_v43 = vadd.f32 %v2013_v60, %v2680_v13  ;;  %v419_v52 = vpop.f32.mrb[11].mxu1  ;;  %v584_v16 = vpack.c.bf16 %v572_v33, %v571_v36 }
 0x249   :  { %v455_v56 = vmul.f32 %v2656_v59, %v417_v18  ;;  %v420_v42 = vadd.f32 %v419_v52, %v2666_v34  ;;  %v583_v27 = vpack.c.bf16 %v570_v23, %v569_v44  ;;  %v2809_v59 = vpop.permute.xlu0 %547 }
 0x24a   :  { %v479_v49 = vadd.f32 %v2748_v21, %v457_v26  ;;  %v458_v46 = vmul.f32 %v2672_v61, %v428_v43 }
 0x24b   :  { %v477_v62 = vadd.f32 %v2748_v21, %v455_v56  ;;  %v456_v5 = vmul.f32 %v2658_v2, %v420_v42 }
 0x24c   :  { %v480_v51 = vadd.f32 %v2748_v21, %v458_v46  ;;  %2021 = vmatpush3.bf16.xpose.msra.mxu0 %v2773_v58  ;;  %v575_v50 = vmul.f32 %v2794_v24, %v479_v49 }
 0x24d   :  { %v478_v13 = vadd.f32 %v2748_v21, %v456_v5  ;;  %v2016_v30 = vpop.f32.mrb[12].mxu1  ;;  %2022 = vmatprep.subr.bf16.mxu0 %v583_v27  ;;  %v573_v17 = vmul.f32 %v2777_v6, %v477_v62 }
 0x24e   :  { %v441_v34 = vadd.f32 %v2016_v30, %v2704_v10  ;;  %v432_v47 = vpop.f32.mrb[13].mxu1  ;;  %v576_v61 = vmul.f32 %v2798_v54, %v480_v51 }
 0x24f   :  { %v433_v2 = vadd.f32 %v432_v47, %v2690_v55  ;;  %v2017_v63 = vpop.f32.mrb[14].mxu1  ;;  %v574_v3 = vmul.f32 %v2781_v31, %v478_v13 }
 0x250   :  { %v461_v36 = vmul.f32 %v2698_v19, %v441_v34  ;;  %v444_v33 = vadd.f32 %v2017_v63, %v2708_v4  ;;  %v435_v18 = vpop.f32.mrb[15].mxu1  ;;  %v586_v10 = vpack.c.bf16 %v576_v61, %v575_v50  ;;  %v2828_v19 = vpop.permute.xlu0 %557 }
 0x251   :  { %v459_v60 = vmul.f32 %v2684_v22, %v433_v2  ;;  %v436_v44 = vadd.f32 %v435_v18, %v2694_v7  ;;  %v585_v23 = vpack.c.bf16 %v574_v3, %v573_v17  ;;  %v2830_v4 = vpop.permute.xlu1 %562 }
 0x252   :  { %v483_v26 = vadd.f32 %v2748_v21, %v461_v36  ;;  %v462_v55 = vmul.f32 %v2700_v53, %v444_v33 }
 0x253   :  { %v481_v43 = vadd.f32 %v2748_v21, %v459_v60  ;;  %v460_v52 = vmul.f32 %v2686_v39, %v436_v44 }
 0x254   :  { %v484_v56 = vadd.f32 %v2748_v21, %v462_v55  ;;  %2023 = vmatpush3.bf16.xpose.msra.mxu0 %v583_v27  ;;  %v579_v7 = vmul.f32 %v2828_v19, %v483_v26 }
 0x255   :  { %v482_v22 = vadd.f32 %v2748_v21, %v460_v52  ;;  %2024 = vmatprep.subr.bf16.mxu0 %v584_v16  ;;  %v577_v53 = vmul.f32 %v2809_v59, %v481_v43 }
 0x256   :  { %v580_v42 = vmul.f32 %v2830_v4, %v484_v56 }
 0x257   :  { %v578_v49 = vmul.f32 %v2814_v57, %v482_v22 }
 0x258   :  { %v588_v46 = vpack.c.bf16 %v580_v42, %v579_v7 }
 0x259   :  { %v587_v39 = vpack.c.bf16 %v578_v49, %v577_v53 }
 0x25c   :  { %2025 = vmatpush3.bf16.xpose.msra.mxu0 %v584_v16 }
 0x25d   :  { %2026 = vmatprep.subr.bf16.mxu0 %v585_v23 }
 0x264   :  { %2027 = vmatpush3.bf16.xpose.msra.mxu0 %v585_v23 }
 0x265   :  { %2028 = vmatprep.subr.bf16.mxu0 %v586_v10 }
 0x26c   :  { %2029 = vmatpush3.bf16.xpose.msra.mxu0 %v586_v10 }
 0x26d   :  { %2030 = vmatprep.subr.bf16.mxu0 %v587_v39 }
 0x274   :  { %2031 = vmatpush3.bf16.xpose.msra.mxu0 %v587_v39 }
 0x275   :  { %2032 = vmatprep.subr.bf16.mxu0 %v588_v46 }
 0x27c   :  { %2033 = vmatpush3.bf16.xpose.msra.mxu0 %v588_v46 }
 0x283   :  { %2035 = vmatmul.mubr.bf16.vlgmr.msra.gmra.mrb[16].mxu0 %v2773_v58 }
 0x284   :  { %2038 = vmatprep.mubr.bf16.mxu0 %v583_v27 }
 0x28b   :  { %2039 = vmatmul.mubr.bf16.gmra.mrb[20].mxu0 %v584_v16 }
 0x28c   :  { %2042 = vmatprep.mubr.bf16.mxu0 %v585_v23 }
 0x293   :  { %2043 = vmatmul.mubr.bf16.gmra.mrb[24].mxu0 %v586_v10 }
 0x294   :  { %2046 = vmatprep.mubr.bf16.mxu0 %v587_v39 }
 0x29b   :  { %2047 = vmatmul.mubr.bf16.gmra.mrb[28].mxu0 %v588_v46 }
 0x356   :  { %v2036_v62 = vpop.f32.mrb[16].mxu0 }
 0x357   :  { %688 = vst [vmem:[%s3589_s14 + $0x10] sm:$0xff] %v2036_v62  ;;  %v2841_v5 = vpop.f32.mrb[17].mxu0 }
 0x358   :  { %686 = vst [vmem:[%s3589_s14] sm:$0xff] %v2841_v5  ;;  %v2037_v51 = vpop.f32.mrb[18].mxu0 }
 0x359   :  { %689 = vst [vmem:[%s3589_s14 + $0x18] sm:$0xff] %v2037_v51  ;;  %v626_v58 = vpop.f32.mrb[19].mxu0 }
 0x35a   :  { %687 = vst [vmem:[%s3589_s14 + $0x8] sm:$0xff] %v626_v58 }
 0x35e   :  { %v2040_v16 = vpop.f32.mrb[20].mxu0 }
 0x35f   :  { %692 = vst [vmem:[%s3589_s14 + $0x30] sm:$0xff] %v2040_v16  ;;  %v704_v27 = vmax.f32 %v2036_v62, %v2040_v16  ;;  %v639_v13 = vpop.f32.mrb[21].mxu0 }
 0x360   :  { %690 = vst [vmem:[%s3589_s14 + $0x20] sm:$0xff] %v639_v13  ;;  %v702_v30 = vmax.f32 %v2841_v5, %v639_v13  ;;  %v2041_v34 = vpop.f32.mrb[22].mxu0 }
 0x361   :  { %693 = vst [vmem:[%s3589_s14 + $0x38] sm:$0xff] %v2041_v34  ;;  %v705_v47 = vmax.f32 %v2037_v51, %v2041_v34  ;;  %v642_v50 = vpop.f32.mrb[23].mxu0 }
 0x362   :  { %691 = vst [vmem:[%s3589_s14 + $0x28] sm:$0xff] %v642_v50  ;;  %v703_v61 = vmax.f32 %v626_v58, %v642_v50 }
 0x366   :  { %v2044_v2 = vpop.f32.mrb[24].mxu0 }
 0x367   :  { %696 = vst [vmem:[%s3589_s14 + $0x50] sm:$0xff] %v2044_v2  ;;  %v708_v63 = vmax.f32 %v704_v27, %v2044_v2  ;;  %v655_v17 = vpop.f32.mrb[25].mxu0  ;;  %v810_v2 = vlaneseq }
 0x368   :  { %694 = vst [vmem:[%s3589_s14 + $0x40] sm:$0xff] %v655_v17  ;;  %v706_v3 = vmax.f32 %v702_v30, %v655_v17  ;;  %v2045_v36 = vpop.f32.mrb[26].mxu0  ;;  %v762_v30 = vmul.f32 0.2, %v2319_v0  ;;  %v862_v0 = vld [vmem:[%s3590_s3] sm:$0xff] }
 0x369   :  { %697 = vst [vmem:[%s3589_s14 + $0x58] sm:$0xff] %v2045_v36  ;;  %v709_v33 = vmax.f32 %v705_v47, %v2045_v36  ;;  %v658_v18 = vpop.f32.mrb[27].mxu0  ;;  %v763_v47 = vmul.f32 0.2, %v2325_v1 }
 0x36a   :  { %695 = vst [vmem:[%s3589_s14 + $0x48] sm:$0xff] %v658_v18  ;;  %v707_v10 = vmax.f32 %v703_v61, %v658_v18  ;;  %v863_v18 = vld [vmem:[%s3590_s3 + $0x8] sm:$0xff] }
 0x36e   :  { %v2048_v60 = vpop.f32.mrb[28].mxu0 }
 0x36f   :  { %700 = vst [vmem:[%s3589_s14 + $0x70] sm:$0xff] %v2048_v60  ;;  %v712_v44 = vmax.f32 %v708_v63, %v2048_v60  ;;  %v671_v23 = vpop.f32.mrb[29].mxu0 }
 0x370   :  { %698 = vst [vmem:[%s3589_s14 + $0x60] sm:$0xff] %v671_v23  ;;  %v710_v26 = vmax.f32 %v706_v3, %v671_v23  ;;  %v2049_v55 = vpop.f32.mrb[30].mxu0 }
 0x371   :  { %701 = vst [vmem:[%s3589_s14 + $0x78] sm:$0xff] %v2049_v55  ;;  %v713_v43 = vmax.f32 %v709_v33, %v2049_v55  ;;  %v674_v52 = vpop.f32.mrb[31].mxu0  ;;  %v2893_v33 = vand.u32 127, %v810_v2 }
 0x372   :  { %699 = vst [vmem:[%s3589_s14 + $0x68] sm:$0xff] %v674_v52  ;;  %v711_v56 = vmax.f32 %v707_v10, %v674_v52 }
 0x373   :  { %v715_v22 = vmax.f32 %v712_v44, %v713_v43  ;;  %vm845_vm0 = vcmp.lt.s32.totalorder %v2893_v33, 16 }
 0x374   :  { %v714_v7 = vmax.f32 %v710_v26, %v711_v56  ;;  %v2902_v26 = vshrl.u32 %v810_v2, 7 }
 0x376   :  { %v716_v42 = vmax.f32 %v714_v7, %v715_v22  ;;  %vm990_vm5 = vcmp.gt.s32.totalorder %v2893_v33, %v2902_v26  ;;  %v812_v55 = vadd.s32 8, %v2902_v26  ;;  %vm974_vm6 = vcmp.eq.s32.totalorder %v2902_v26, %v2893_v33 }
 0x377   :  { %v813_v22 = vadd.s32 16, %v2902_v26 }
 0x378   :  { %717 = vmax.xlane.f32.xlu0 %v716_v42  ;;  %vm991_vm7 = vcmp.gt.s32.totalorder %v2893_v33, %v812_v55  ;;  %vm975_vm8 = vcmp.eq.s32.totalorder %v812_v55, %v2893_v33  ;;  %v820_v55 = vadd.s32 72, %v2902_v26 }
 0x379   :  { %vm992_vm9 = vcmp.gt.s32.totalorder %v2893_v33, %v813_v22  ;;  %vm976_vm10 = vcmp.eq.s32.totalorder %v813_v22, %v2893_v33 }
 0x405   :  { %v718_v53 = vpop.xlane.xlu0 %717 }
 0x406   :  { %v719_v49 = vrot.slane %v718_v53, 4 }
 0x408   :  { %v720_v46 = vmax.f32 %v718_v53, %v719_v49  ;;  %v814_v49 = vadd.s32 24, %v2902_v26 }
 0x40a   :  { %v721_v39 = vrot.slane %v720_v46, 2  ;;  %vm993_vm11 = vcmp.gt.s32.totalorder %v2893_v33, %v814_v49  ;;  %vm977_vm12 = vcmp.eq.s32.totalorder %v814_v49, %v2893_v33 }
 0x40c   :  { %v722_v62 = vmax.f32 %v720_v46, %v721_v39 }
 0x40e   :  { %v723_v51 = vrot.slane %v722_v62, 1 }
 0x410   :  { %v724_v16 = vmax.f32 %v722_v62, %v723_v51 }
 0x412   :  { %2162 = vpush %v724_v16  ;;  %v815_v16 = vadd.s32 32, %v2902_v26 }
 0x414   :  { %vm994_vm13 = vcmp.gt.s32.totalorder %v2893_v33, %v815_v16  ;;  %vm978_vm14 = vcmp.eq.s32.totalorder %v815_v16, %v2893_v33 }
 0x443   :  { %s2163_s15 = spop %2162 }
 0x444   :  { %v726_v27 = vstv %s2163_s15 }
 0x445   :  { %2202 = vrcp.f32 %v726_v27 }
 0x44f   :  { %v2203_v13 = vpop.eup %2202 }
 0x450   :  { %2164 = vpush %v2203_v13 }
 0x481   :  { %s2165_s16 = spop %2164 }
 0x482   :  { %v729_v34 = vstv %s2165_s16 }
 0x483   :  { %v730_v50 = vmul.f32 %v729_v34, %v2841_v5  ;;  %v731_v61 = vmul.f32 %v729_v34, %v626_v58  ;;  %v2240_v58 = vmov 0.0   ;;  %v816_v34 = vadd.s32 40, %v2902_v26 }
 0x485   :  { %v746_v63 = vmul.f32 0.8, %v730_v50  ;;  %v747_v17 = vmul.f32 0.8, %v731_v61  ;;  %vm995_vm15 = vcmp.gt.s32.totalorder %v2893_v33, %v816_v34 }
 0x487   :  { %v778_v3 = vadd.f32 %v762_v30, %v746_v63  ;;  %v779_v36 = vadd.f32 %v763_v47, %v747_v17  ;;  %v817_v63 = vadd.s32 48, %v2902_v26 }
 0x489   :  { %v794_v10 = vmax.f32 %v778_v3, 0.0  ;;  %v795_v1 = vmax.f32 %v779_v36, 0.0 }
 0x48b   :  { %v879_v60 = vadd.f32 %v863_v18, %v795_v1  ;;  %v878_v5 = vadd.f32 %v862_v0, %v794_v10  ;;  %v818_v18 = vadd.s32 56, %v2902_v26 }
 0x48d   :  { %vm894_vm1 = vcmp.ge.f32.partialorder %v878_v5, 1.0  ;;  %vm895_vm2 = vcmp.ge.f32.partialorder %v879_v60, 1.0  ;;  %v819_v5 = vadd.s32 64, %v2902_v26 }
 0x48e   :  { %vm910_vm3 = vmand %vm894_vm1, %vm845_vm0  ;;  %vm996_vm1 = vcmp.gt.s32.totalorder %v2893_v33, %v817_v63 }
 0x48f   :  { %v926_v44 = vsel %vm910_vm3, 1.0, %v2240_v58  ;;  %vm911_vm4 = vmand %vm895_vm2, %vm845_vm0  ;;  %vm979_vm0 = vcmp.eq.s32.totalorder %v816_v34, %v2893_v33  ;;  %vm980_vm2 = vcmp.eq.s32.totalorder %v817_v63, %v2893_v33  ;;  %vm997_vm3 = vcmp.gt.s32.totalorder %v2893_v33, %v818_v18 }
 0x490   :  { %942 = vxpose.xlu1.b32.start [1/2] (short) %v926_v44, 128  ;;  %v927_v23 = vsel %vm911_vm4, 1.0, %v2240_v58  ;;  %vm981_vm4 = vcmp.eq.s32.totalorder %v818_v18, %v2893_v33 }
 0x494   :  { %943 = vxpose.xlu1.b32.end [2/2] (short) %v927_v23, 128 }
 0x510   :  { %v958_v43 = vpop.trf.xlu1 }
 0x511   :  { %v1006_v52 = vsel %vm990_vm5, %v926_v44, %v958_v43  ;;  %vm998_vm5 = vcmp.gt.s32.totalorder %v2893_v33, %v819_v5 }
 0x512   :  { %v1022_v56 = vsel %vm974_vm6, 1.0, %v1006_v52  ;;  %vm982_vm6 = vcmp.eq.s32.totalorder %v819_v5, %v2893_v33 }
 0x513   :  { %1062 = vadd.xlane.f32.xlu0 %v1022_v56  ;;  %1038 = vst [vmem:[%s3591_s13] sm:$0xff] %v1022_v56 }
 0x514   :  { %v959_v7 = vpop.trf.xlu1 }
 0x515   :  { %v1007_v42 = vsel %vm991_vm7, %v927_v23, %v959_v7  ;;  %vm999_vm7 = vcmp.gt.s32.totalorder %v2893_v33, %v820_v55  ;;  %v821_v7 = vadd.s32 80, %v2902_v26 }
 0x516   :  { %v1023_v53 = vsel %vm975_vm8, 1.0, %v1007_v42  ;;  %vm983_vm8 = vcmp.eq.s32.totalorder %v820_v55, %v2893_v33 }
 0x517   :  { %1064 = vadd.xlane.f32.xlu0 %v1023_v53  ;;  %1039 = vst [vmem:[%s3591_s13 + $0x8] sm:$0xff] %v1023_v53  ;;  %v1054_v46 = vpack.c.bf16 %v1023_v53, %v1022_v56 }
 0x518   :  { %v960_v39 = vpop.trf.xlu1 }
 0x519   :  { %v1008_v62 = vsel %vm992_vm9, 0.0, %v960_v39  ;;  %2066 = vmatprep.mubr.bf16.mxu1 %v1054_v46  ;;  %2130 = vmatprep.mubr.bf16.mxu0 %v1054_v46  ;;  %vm1000_vm9 = vcmp.gt.s32.totalorder %v2893_v33, %v821_v7  ;;  %v822_v46 = vadd.s32 88, %v2902_v26 }
 0x51a   :  { %v1024_v51 = vsel %vm976_vm10, 1.0, %v1008_v62  ;;  %vm984_vm10 = vcmp.eq.s32.totalorder %v821_v7, %v2893_v33 }
 0x51b   :  { %1040 = vst [vmem:[%s3591_s13 + $0x10] sm:$0xff] %v1024_v51  ;;  %1066 = vadd.xlane.f32.xlu0 %v1024_v51 }
 0x51c   :  { %v961_v27 = vpop.trf.xlu1 }
 0x51d   :  { %v1009_v13 = vsel %vm993_vm11, 0.0, %v961_v27  ;;  %vm1001_vm11 = vcmp.gt.s32.totalorder %v2893_v33, %v822_v46  ;;  %v823_v27 = vadd.s32 96, %v2902_v26 }
 0x51e   :  { %v1025_v30 = vsel %vm977_vm12, 1.0, %v1009_v13  ;;  %vm985_vm12 = vcmp.eq.s32.totalorder %v822_v46, %v2893_v33 }
 0x51f   :  { %1041 = vst [vmem:[%s3591_s13 + $0x18] sm:$0xff] %v1025_v30  ;;  %v2932_v47 = vpack.c.bf16 %v1025_v30, %v1024_v51  ;;  %1068 = vadd.xlane.f32.xlu0 %v1025_v30 }
 0x520   :  { %v962_v50 = vpop.trf.xlu1 }
 0x521   :  { %3633 = vst [vmem:[#allocation9_spill] sm:$0xff] %v2932_v47  ;;  %v1010_v61 = vsel %vm994_vm13, 0.0, %v962_v50  ;;  %vm1002_vm13 = vcmp.gt.s32.totalorder %v2893_v33, %v823_v27  ;;  %v824_v50 = vadd.s32 104, %v2902_v26 }
 0x522   :  { %v1026_v2 = vsel %vm978_vm14, 1.0, %v1010_v61  ;;  %vm986_vm14 = vcmp.eq.s32.totalorder %v823_v27, %v2893_v33 }
 0x523   :  { %1042 = vst [vmem:[%s3591_s13 + $0x20] sm:$0xff] %v1026_v2  ;;  %1070 = vadd.xlane.f32.xlu1 %v1026_v2 }
 0x524   :  { %v963_v17 = vpop.trf.xlu1 }
 0x525   :  { %v1011_v3 = vsel %vm995_vm15, 0.0, %v963_v17  ;;  %vm1003_vm15 = vcmp.gt.s32.totalorder %v2893_v33, %v824_v50 }
 0x526   :  { %v1027_v36 = vsel %vm979_vm0, 1.0, %v1011_v3  ;;  %v825_v3 = vadd.s32 112, %v2902_v26  ;;  %vm987_vm0 = vcmp.eq.s32.totalorder %v824_v50, %v2893_v33 }
 0x527   :  { %1043 = vst [vmem:[%s3591_s13 + $0x28] sm:$0xff] %v1027_v36  ;;  %v2946_v0 = vpack.c.bf16 %v1027_v36, %v1026_v2  ;;  %1072 = vadd.xlane.f32.xlu0 %v1027_v36 }
 0x528   :  { %v964_v10 = vpop.trf.xlu1 }
 0x529   :  { %3634 = vst [vmem:[#allocation10_spill] sm:$0xff] %v2946_v0  ;;  %v1012_v1 = vsel %vm996_vm1, 0.0, %v964_v10  ;;  %vm1004_vm1 = vcmp.gt.s32.totalorder %v2893_v33, %v825_v3 }
 0x52a   :  { %v1028_v60 = vsel %vm980_vm2, 1.0, %v1012_v1  ;;  %v826_v1 = vadd.s32 120, %v2902_v26  ;;  %vm988_vm2 = vcmp.eq.s32.totalorder %v825_v3, %v2893_v33 }
 0x52b   :  { %1044 = vst [vmem:[%s3591_s13 + $0x30] sm:$0xff] %v1028_v60  ;;  %1074 = vadd.xlane.f32.xlu0 %v1028_v60 }
 0x52c   :  { %v965_v58 = vpop.trf.xlu1 }
 0x52d   :  { %v1013_v44 = vsel %vm997_vm3, 0.0, %v965_v58  ;;  %vm1005_vm3 = vcmp.gt.s32.totalorder %v2893_v33, %v826_v1 }
 0x52e   :  { %v1029_v23 = vsel %vm981_vm4, 1.0, %v1013_v44  ;;  %vm989_vm4 = vcmp.eq.s32.totalorder %v826_v1, %v2893_v33 }
 0x52f   :  { %1045 = vst [vmem:[%s3591_s13 + $0x38] sm:$0xff] %v1029_v23  ;;  %v2960_v43 = vpack.c.bf16 %v1029_v23, %v1028_v60  ;;  %1076 = vadd.xlane.f32.xlu0 %v1029_v23 }
 0x530   :  { %v966_v52 = vpop.trf.xlu1 }
 0x531   :  { %3635 = vst [vmem:[#allocation11_spill] sm:$0xff] %v2960_v43  ;;  %v1014_v56 = vsel %vm998_vm5, 0.0, %v966_v52 }
 0x532   :  { %v1030_v22 = vsel %vm982_vm6, 1.0, %v1014_v56 }
 0x533   :  { %1046 = vst [vmem:[%s3591_s13 + $0x40] sm:$0xff] %v1030_v22  ;;  %1078 = vadd.xlane.f32.xlu0 %v1030_v22 }
 0x534   :  { %v967_v42 = vpop.trf.xlu1 }
 0x535   :  { %v1015_v53 = vsel %vm999_vm7, 0.0, %v967_v42 }
 0x536   :  { %v1031_v49 = vsel %vm983_vm8, 1.0, %v1015_v53 }
 0x537   :  { %1047 = vst [vmem:[%s3591_s13 + $0x48] sm:$0xff] %v1031_v49  ;;  %v2974_v39 = vpack.c.bf16 %v1031_v49, %v1030_v22  ;;  %1080 = vadd.xlane.f32.xlu0 %v1031_v49 }
 0x538   :  { %v968_v62 = vpop.trf.xlu1 }
 0x539   :  { %v1016_v51 = vsel %vm1000_vm9, 0.0, %v968_v62 }
 0x53a   :  { %v1032_v16 = vsel %vm984_vm10, 1.0, %v1016_v51 }
 0x53b   :  { %1048 = vst [vmem:[%s3591_s13 + $0x50] sm:$0xff] %v1032_v16  ;;  %1082 = vadd.xlane.f32.xlu0 %v1032_v16 }
 0x53c   :  { %v969_v13 = vpop.trf.xlu1 }
 0x53d   :  { %v1017_v30 = vsel %vm1001_vm11, 0.0, %v969_v13 }
 0x53e   :  { %v1033_v34 = vsel %vm985_vm12, 1.0, %v1017_v30 }
 0x53f   :  { %1049 = vst [vmem:[%s3591_s13 + $0x58] sm:$0xff] %v1033_v34  ;;  %v2988_v61 = vpack.c.bf16 %v1033_v34, %v1032_v16  ;;  %1084 = vadd.xlane.f32.xlu0 %v1033_v34 }
 0x540   :  { %v970_v2 = vpop.trf.xlu1 }
 0x541   :  { %3636 = vst [vmem:[#allocation12_spill] sm:$0xff] %v2988_v61  ;;  %v1018_v63 = vsel %vm1002_vm13, 0.0, %v970_v2 }
 0x542   :  { %v1034_v17 = vsel %vm986_vm14, 1.0, %v1018_v63 }
 0x543   :  { %1050 = vst [vmem:[%s3591_s13 + $0x60] sm:$0xff] %v1034_v17  ;;  %1086 = vadd.xlane.f32.xlu0 %v1034_v17 }
 0x544   :  { %v971_v36 = vpop.trf.xlu1 }
 0x545   :  { %v1019_v18 = vsel %vm1003_vm15, 0.0, %v971_v36 }
 0x546   :  { %v1035_v10 = vsel %vm987_vm0, 1.0, %v1019_v18 }
 0x547   :  { %1051 = vst [vmem:[%s3591_s13 + $0x68] sm:$0xff] %v1035_v10  ;;  %v3002_v60 = vpack.c.bf16 %v1035_v10, %v1034_v17  ;;  %1088 = vadd.xlane.f32.xlu0 %v1035_v10 }
 0x548   :  { %v972_v5 = vpop.trf.xlu1 }
 0x549   :  { %3637 = vst [vmem:[#allocation13_spill] sm:$0xff] %v3002_v60  ;;  %v1020_v58 = vsel %vm1004_vm1, 0.0, %v972_v5 }
 0x54a   :  { %v1036_v44 = vsel %vm988_vm2, 1.0, %v1020_v58 }
 0x54b   :  { %1052 = vst [vmem:[%s3591_s13 + $0x70] sm:$0xff] %v1036_v44  ;;  %1090 = vadd.xlane.f32.xlu0 %v1036_v44 }
 0x54c   :  { %v973_v26 = vpop.trf.xlu1 }
 0x54d   :  { %v1021_v23 = vsel %vm1005_vm3, 0.0, %v973_v26 }
 0x54e   :  { %v1037_v55 = vsel %vm989_vm4, 1.0, %v1021_v23 }
 0x54f   :  { %1053 = vst [vmem:[%s3591_s13 + $0x78] sm:$0xff] %v1037_v55  ;;  %v3013_v52 = vpack.c.bf16 %v1037_v55, %v1036_v44  ;;  %1092 = vadd.xlane.f32.xlu0 %v1037_v55 }
 0x551   :  { %3638 = vst [vmem:[#allocation14_spill] sm:$0xff] %v3013_v52 }
 0x5a0   :  { %v1063_v56 = vpop.xlane.xlu0 %1062 }
 0x5a1   :  { %2204 = vrsqrt.f32 %v1063_v56 }
 0x5a4   :  { %v1065_v22 = vpop.xlane.xlu0 %1064 }
 0x5a5   :  { %2206 = vrsqrt.f32 %v1065_v22 }
 0x5a8   :  { %v1067_v7 = vpop.xlane.xlu0 %1066 }
 0x5a9   :  { %2208 = vrsqrt.f32 %v1067_v7 }
 0x5ab   :  { %v3015_v53 = vpop.eup %2204 }
 0x5ac   :  { %v1069_v42 = vpop.xlane.xlu0 %1068  ;;  %v1110_v46 = vmul.f32 %v3015_v53, %v2525_v28 }
 0x5ad   :  { %2210 = vrsqrt.f32 %v1069_v42 }
 0x5af   :  { %v3017_v33 = vpop.eup %2206 }
 0x5b0   :  { %v1071_v49 = vpop.xlane.xlu1 %1070  ;;  %v1111_v62 = vmul.f32 %v3017_v33, %v2535_v32 }
 0x5b1   :  { %2212 = vrsqrt.f32 %v1071_v49  ;;  %v3640_v49 = vld [vmem:[#allocation3_spill] sm:$0xff] }
 0x5b2   :  { %v1126_v51 = vpack.c.bf16 %v1111_v62, %v1110_v46  ;;  %v3641_v62 = vld [vmem:[#allocation4_spill] sm:$0xff] }
 0x5b3   :  { %v3023_v27 = vpop.eup %2208 }
 0x5b4   :  { %2050 = vmatprep.subr.bf16.mxu1 %v1126_v51  ;;  %v1073_v16 = vpop.xlane.xlu0 %1072  ;;  %v1112_v34 = vmul.f32 %v3023_v27, %v2520_v25 }
 0x5b5   :  { %2214 = vrsqrt.f32 %v1073_v16  ;;  %2051 = vmatpush3.bf16.msra.mxu1 %v1126_v51 }
 0x5b7   :  { %v3025_v13 = vpop.eup %2210 }
 0x5b8   :  { %v1075_v30 = vpop.xlane.xlu0 %1074  ;;  %v1113_v28 = vmul.f32 %v3025_v13, %v2527_v29 }
 0x5b9   :  { %2216 = vrsqrt.f32 %v1075_v30 }
 0x5ba   :  { %v1127_v50 = vpack.c.bf16 %v1113_v28, %v1112_v34  ;;  %v3644_v34 = vld [vmem:[#allocation6_spill] sm:$0xff] }
 0x5bb   :  { %v3031_v2 = vpop.eup %2212 }
 0x5bc   :  { %2052 = vmatprep.subr.bf16.mxu1 %v1127_v50  ;;  %v1077_v32 = vpop.xlane.xlu0 %1076  ;;  %v1114_v3 = vmul.f32 %v3031_v2, %v2548_v37 }
 0x5bd   :  { %2218 = vrsqrt.f32 %v1077_v32  ;;  %2053 = vmatpush3.bf16.msra.mxu1 %v1127_v50  ;;  %v3645_v50 = vld [vmem:[#allocation8_spill] sm:$0xff] }
 0x5bf   :  { %v3033_v63 = vpop.eup %2214 }
 0x5c0   :  { %v1079_v17 = vpop.xlane.xlu0 %1078  ;;  %v1115_v25 = vmul.f32 %v3033_v63, %v2555_v40 }
 0x5c1   :  { %2220 = vrsqrt.f32 %v1079_v17 }
 0x5c2   :  { %v1128_v36 = vpack.c.bf16 %v1115_v25, %v1114_v3 }
 0x5c3   :  { %v3039_v18 = vpop.eup %2216 }
 0x5c4   :  { %v1081_v29 = vpop.xlane.xlu0 %1080  ;;  %2054 = vmatprep.subr.bf16.mxu1 %v1128_v36  ;;  %v1116_v5 = vmul.f32 %v3039_v18, %v2543_v35 }
 0x5c5   :  { %2222 = vrsqrt.f32 %v1081_v29  ;;  %2055 = vmatpush3.bf16.msra.mxu1 %v1128_v36  ;;  %v3648_v36 = vld [vmem:[#allocation5_spill] sm:$0xff] }
 0x5c7   :  { %v3041_v10 = vpop.eup %2218 }
 0x5c8   :  { %v1083_v1 = vpop.xlane.xlu0 %1082  ;;  %v1117_v37 = vmul.f32 %v3041_v10, %v2550_v38 }
 0x5c9   :  { %2224 = vrsqrt.f32 %v1083_v1  ;;  %v3649_v1 = vld [vmem:[#allocation7_spill] sm:$0xff] }
 0x5ca   :  { %v1129_v58 = vpack.c.bf16 %v1117_v37, %v1116_v5 }
 0x5cb   :  { %v3047_v44 = vpop.eup %2220 }
 0x5cc   :  { %v1085_v40 = vpop.xlane.xlu0 %1084  ;;  %2056 = vmatprep.subr.bf16.mxu1 %v1129_v58  ;;  %v1118_v55 = vmul.f32 %v3047_v44, %v2568_v45 }
 0x5cd   :  { %2226 = vrsqrt.f32 %v1085_v40  ;;  %2057 = vmatpush3.bf16.msra.mxu1 %v1129_v58  ;;  %v1533_v58 = vld [vmem:[%s3592_s7] sm:$0xff]  ;;  %v1534_v40 = vld [vmem:[%s3592_s7 + $0x8] sm:$0xff] }
 0x5cf   :  { %v3049_v26 = vpop.eup %2222 }
 0x5d0   :  { %3639 = vst [vmem:[#allocation15_spill] sm:$0xff] %v3049_v26  ;;  %v1087_v23 = vpop.xlane.xlu0 %1086  ;;  %v1119_v35 = vmul.f32 %v3049_v26, %v2575_v48 }
 0x5d1   :  { %2228 = vrsqrt.f32 %v1087_v23  ;;  %v1535_v23 = vld [vmem:[%s3592_s7 + $0x10] sm:$0xff] }
 0x5d2   :  { %v1130_v56 = vpack.c.bf16 %v1119_v35, %v1118_v55  ;;  %v1557_v55 = vpack.c.bf16 %v1534_v40, %v1533_v58  ;;  %v1536_v35 = vld [vmem:[%s3592_s7 + $0x18] sm:$0xff] }
 0x5d3   :  { %v3055_v22 = vpop.eup %2224 }
 0x5d4   :  { %v1089_v38 = vpop.xlane.xlu0 %1088  ;;  %2058 = vmatprep.subr.bf16.mxu1 %v1130_v56  ;;  %v1120_v46 = vmul.f32 %v3055_v22, %v3640_v49 }
 0x5d5   :  { %2230 = vrsqrt.f32 %v1089_v38  ;;  %2059 = vmatpush3.bf16.msra.mxu1 %v1130_v56  ;;  %v1558_v56 = vpack.c.bf16 %v1536_v35, %v1535_v23  ;;  %v1537_v38 = vld [vmem:[%s3592_s7 + $0x20] sm:$0xff] }
 0x5d7   :  { %v3057_v7 = vpop.eup %2226 }
 0x5d8   :  { %v1091_v42 = vpop.xlane.xlu0 %1090  ;;  %v1121_v45 = vmul.f32 %v3057_v7, %v3641_v62  ;;  %v1540_v62 = vld [vmem:[%s3592_s7 + $0x38] sm:$0xff] }
 0x5d9   :  { %2232 = vrsqrt.f32 %v1091_v42  ;;  %v1538_v42 = vld [vmem:[%s3592_s7 + $0x28] sm:$0xff] }
 0x5da   :  { %v1131_v51 = vpack.c.bf16 %v1121_v45, %v1120_v46  ;;  %v1559_v49 = vpack.c.bf16 %v1538_v42, %v1537_v38  ;;  %v1539_v46 = vld [vmem:[%s3592_s7 + $0x30] sm:$0xff] }
 0x5db   :  { %v3063_v16 = vpop.eup %2228  ;;  %v1560_v45 = vpack.c.bf16 %v1540_v62, %v1539_v46 }
 0x5dc   :  { %v1093_v48 = vpop.xlane.xlu0 %1092  ;;  %2060 = vmatprep.subr.bf16.mxu1 %v1131_v51  ;;  %3642 = vst [vmem:[#allocation3_spill] sm:$0xff] %v3063_v16  ;;  %v1122_v28 = vmul.f32 %v3063_v16, %v3644_v34 }
 0x5dd   :  { %2234 = vrsqrt.f32 %v1093_v48  ;;  %2061 = vmatpush3.bf16.msra.mxu1 %v1131_v51  ;;  %v1541_v51 = vld [vmem:[%s3592_s7 + $0x40] sm:$0xff]  ;;  %v1542_v48 = vld [vmem:[%s3592_s7 + $0x48] sm:$0xff] }
 0x5de   :  { %v1561_v34 = vpack.c.bf16 %v1542_v48, %v1541_v51 }
 0x5df   :  { %v3065_v30 = vpop.eup %2230 }
 0x5e0   :  { %3643 = vst [vmem:[#allocation4_spill] sm:$0xff] %v3065_v30  ;;  %v1123_v32 = vmul.f32 %v3065_v30, %v3645_v50  ;;  %v1544_v50 = vld [vmem:[%s3592_s7 + $0x58] sm:$0xff] }
 0x5e2   :  { %v1132_v17 = vpack.c.bf16 %v1123_v32, %v1122_v28  ;;  %v1543_v28 = vld [vmem:[%s3592_s7 + $0x50] sm:$0xff] }
 0x5e3   :  { %v3071_v3 = vpop.eup %2232  ;;  %v1562_v32 = vpack.c.bf16 %v1544_v50, %v1543_v28 }
 0x5e4   :  { %2062 = vmatprep.subr.bf16.mxu1 %v1132_v17  ;;  %3646 = vst [vmem:[#allocation6_spill] sm:$0xff] %v3071_v3  ;;  %v1124_v29 = vmul.f32 %v3071_v3, %v3648_v36  ;;  %v1546_v36 = vld [vmem:[%s3592_s7 + $0x68] sm:$0xff] }
 0x5e5   :  { %2063 = vmatpush3.bf16.msra.mxu1 %v1132_v17  ;;  %v1545_v17 = vld [vmem:[%s3592_s7 + $0x60] sm:$0xff] }
 0x5e7   :  { %v3073_v25 = vpop.eup %2234 }
 0x5e8   :  { %3647 = vst [vmem:[#allocation8_spill] sm:$0xff] %v3073_v25  ;;  %v1125_v5 = vmul.f32 %v3073_v25, %v3649_v1  ;;  %v1547_v1 = vld [vmem:[%s3592_s7 + $0x70] sm:$0xff] }
 0x5ea   :  { %v1133_v37 = vpack.c.bf16 %v1125_v5, %v1124_v29  ;;  %v1563_v29 = vpack.c.bf16 %v1546_v36, %v1545_v17  ;;  %v1548_v5 = vld [vmem:[%s3592_s7 + $0x78] sm:$0xff] }
 0x5ec   :  { %2064 = vmatprep.subr.bf16.mxu1 %v1133_v37 }
 0x5ed   :  { %2065 = vmatpush3.bf16.msra.mxu1 %v1133_v37  ;;  %v1564_v37 = vpack.c.bf16 %v1548_v5, %v1547_v1 }
 0x5ee   :  { %2082 = vmatprep.subr.bf16.mxu1 %v1557_v55 }
 0x5f0   :  { %2067 = vmatmul.mubr.bf16.vlgmr.msra.gmra.mrb[16].mxu1 %v2932_v47 }
 0x5f1   :  { %2070 = vmatprep.mubr.bf16.mxu1 %v2946_v0  ;;  %2083 = vmatpush3.bf16.msra.mxu1 %v1557_v55 }
 0x5f2   :  { %2084 = vmatprep.subr.bf16.mxu1 %v1558_v56 }
 0x5f5   :  { %2085 = vmatpush3.bf16.msra.mxu1 %v1558_v56 }
 0x5f6   :  { %2086 = vmatprep.subr.bf16.mxu1 %v1559_v49 }
 0x5f8   :  { %2071 = vmatmul.mubr.bf16.gmra.mrb[20].mxu1 %v2960_v43 }
 0x5f9   :  { %2074 = vmatprep.mubr.bf16.mxu1 %v2974_v39  ;;  %2087 = vmatpush3.bf16.msra.mxu1 %v1559_v49  ;;  %v3141_v49 = vstv %s3593_s0 }
 0x5fa   :  { %2088 = vmatprep.subr.bf16.mxu1 %v1560_v45 }
 0x5fd   :  { %2089 = vmatpush3.bf16.msra.mxu1 %v1560_v45 }
 0x5fe   :  { %2090 = vmatprep.subr.bf16.mxu1 %v1561_v34 }
 0x600   :  { %2075 = vmatmul.mubr.bf16.gmra.mrb[24].mxu1 %v2988_v61 }
 0x601   :  { %2078 = vmatprep.mubr.bf16.mxu1 %v3002_v60  ;;  %2091 = vmatpush3.bf16.msra.mxu1 %v1561_v34 }
 0x602   :  { %2092 = vmatprep.subr.bf16.mxu1 %v1562_v32 }
 0x605   :  { %2093 = vmatpush3.bf16.msra.mxu1 %v1562_v32 }
 0x606   :  { %2094 = vmatprep.subr.bf16.mxu1 %v1563_v29 }
 0x608   :  { %2079 = vmatmul.mubr.bf16.gmra.mrb[28].mxu1 %v3013_v52 }
 0x609   :  { %2095 = vmatpush3.bf16.msra.mxu1 %v1563_v29 }
 0x60a   :  { %2096 = vmatprep.subr.bf16.mxu1 %v1564_v37 }
 0x60d   :  { %2097 = vmatpush3.bf16.msra.mxu1 %v1564_v37 }
 0x6c3   :  { %v2068_v58 = vpop.f32.mrb[16].mxu1 }
 0x6c4   :  { %v1233_v40 = vmul.f32 %v3023_v27, %v2068_v58  ;;  %v1168_v23 = vpop.f32.mrb[17].mxu1 }
 0x6c5   :  { %v1231_v55 = vmul.f32 %v3015_v53, %v1168_v23  ;;  %v2069_v35 = vpop.f32.mrb[18].mxu1 }
 0x6c6   :  { %v1249_v56 = vadd.f32 %v2748_v21, %v1233_v40  ;;  %v1234_v38 = vmul.f32 %v3025_v13, %v2069_v35  ;;  %v1171_v42 = vpop.f32.mrb[19].mxu1  ;;  %v3186_v35 = vld [vmem:[%s3588_s6] ss:$0 sm:$0xff] }
 0x6c7   :  { %v1247_v46 = vadd.f32 %v2748_v21, %v1231_v55  ;;  %v1232_v62 = vmul.f32 %v3017_v33, %v1171_v42 }
 0x6c8   :  { %v3146_v45 = vmul.f32 %v1249_v56, %v2734_v9  ;;  %v1250_v51 = vadd.f32 %v2748_v21, %v1234_v38 }
 0x6c9   :  { %v3150_v48 = vmul.f32 %v1247_v46, %v2759_v15  ;;  %v1248_v34 = vadd.f32 %v2748_v21, %v1232_v62 }
 0x6ca   :  { %vm1282_vm5 = vcmp.ge.f32.partialorder %v3146_v45, 0.0  ;;  %v1299_v28 = vmul.f32 %v3141_v49, %v3146_v45  ;;  %v3157_v50 = vmul.f32 %v1250_v51, %v2736_v11 }
 0x6cb   :  { %vm1280_vm6 = vcmp.ge.f32.partialorder %v3150_v48, 0.0  ;;  %v1297_v32 = vmul.f32 %v3141_v49, %v3150_v48  ;;  %v3163_v17 = vmul.f32 %v1248_v34, %v2732_v8  ;;  %v2072_v36 = vpop.f32.mrb[20].mxu1 }
 0x6cc   :  { %v1315_v29 = vsel %vm1282_vm5, %v3146_v45, %v1299_v28  ;;  %vm1283_vm7 = vcmp.ge.f32.partialorder %v3157_v50, 0.0  ;;  %v1300_v21 = vmul.f32 %v3141_v49, %v3157_v50  ;;  %v1237_v1 = vmul.f32 %v3039_v18, %v2072_v36  ;;  %v1184_v5 = vpop.f32.mrb[21].mxu1 }
 0x6cd   :  { %1331 = vst [vmem:[%s3594_s12 + $0x10] sm:$0xff] %v1315_v29  ;;  %v1313_v37 = vsel %vm1280_vm6, %v3150_v48, %v1297_v32  ;;  %vm1281_vm8 = vcmp.ge.f32.partialorder %v3163_v17, 0.0  ;;  %v1298_v58 = vmul.f32 %v3141_v49, %v3163_v17  ;;  %v1345_v40 = vadd.f32 %v3163_v17, %v3150_v48  ;;  %v2073_v23 = vpop.f32.mrb[22].mxu1 }
 0x6ce   :  { %1329 = vst [vmem:[%s3594_s12] sm:$0xff] %v1313_v37  ;;  %v1316_v55 = vsel %vm1283_vm7, %v3157_v50, %v1300_v21  ;;  %v1253_v56 = vadd.f32 %v3186_v35, %v1237_v1  ;;  %v1235_v38 = vmul.f32 %v3031_v2, %v1184_v5  ;;  %v1238_v42 = vmul.f32 %v3041_v10, %v2073_v23  ;;  %v1187_v46 = vpop.f32.mrb[23].mxu1 }
 0x6cf   :  { %1332 = vst [vmem:[%s3594_s12 + $0x18] sm:$0xff] %v1316_v55  ;;  %v1314_v62 = vsel %vm1281_vm8, %v3163_v17, %v1298_v58  ;;  %v1346_v51 = vadd.f32 %v1345_v40, %v3146_v45  ;;  %v1236_v34 = vmul.f32 %v3033_v63, %v1187_v46 }
 0x6d0   :  { %1330 = vst [vmem:[%s3594_s12 + $0x8] sm:$0xff] %v1314_v62  ;;  %v3201_v28 = vmul.f32 %v1253_v56, %v2743_v20  ;;  %v1251_v32 = vadd.f32 %v3186_v35, %v1235_v38  ;;  %v1254_v36 = vadd.f32 %v3186_v35, %v1238_v42 }
 0x6d1   :  { %v1347_v29 = vadd.f32 %v1346_v51, %v3157_v50  ;;  %v1252_v21 = vadd.f32 %v3186_v35, %v1236_v34 }
 0x6d2   :  { %vm1286_vm9 = vcmp.ge.f32.partialorder %v3201_v28, 0.0  ;;  %v1303_v1 = vmul.f32 %v3141_v49, %v3201_v28  ;;  %v3211_v5 = vmul.f32 %v1251_v32, %v2738_v12  ;;  %v3214_v37 = vmul.f32 %v1254_v36, %v2762_v41 }
 0x6d3   :  { %v3217_v58 = vmul.f32 %v1252_v21, %v2740_v14  ;;  %v2076_v40 = vpop.f32.mrb[24].mxu1 }
 0x6d4   :  { %v1319_v23 = vsel %vm1286_vm9, %v3201_v28, %v1303_v1  ;;  %vm1284_vm10 = vcmp.ge.f32.partialorder %v3211_v5, 0.0  ;;  %v1301_v55 = vmul.f32 %v3141_v49, %v3211_v5  ;;  %v1348_v56 = vadd.f32 %v1347_v29, %v3211_v5  ;;  %v1200_v38 = vpop.f32.mrb[25].mxu1 }
 0x6d5   :  { %1335 = vst [vmem:[%s3594_s12 + $0x30] sm:$0xff] %v1319_v23  ;;  %vm1287_vm11 = vcmp.ge.f32.partialorder %v3214_v37, 0.0  ;;  %v1304_v42 = vmul.f32 %v3141_v49, %v3214_v37  ;;  %vm1285_vm12 = vcmp.ge.f32.partialorder %v3217_v58, 0.0  ;;  %v1302_v46 = vmul.f32 %v3141_v49, %v3217_v58  ;;  %v2077_v62 = vpop.f32.mrb[26].mxu1 }
 0x6d6   :  { %v1317_v51 = vsel %vm1284_vm10, %v3211_v5, %v1301_v55  ;;  %v1349_v34 = vadd.f32 %v1348_v56, %v3217_v58  ;;  %v1241_v32 = vmul.f32 %v3055_v22, %v2076_v40  ;;  %v1239_v36 = vmul.f32 %v3047_v44, %v1200_v38  ;;  %v1203_v29 = vpop.f32.mrb[27].mxu1 }
 0x6d7   :  { %1333 = vst [vmem:[%s3594_s12 + $0x20] sm:$0xff] %v1317_v51  ;;  %v1320_v21 = vsel %vm1287_vm11, %v3214_v37, %v1304_v42  ;;  %v1318_v1 = vsel %vm1285_vm12, %v3217_v58, %v1302_v46  ;;  %v1242_v23 = vmul.f32 %v3057_v7, %v2077_v62  ;;  %v1240_v52 = vmul.f32 %v3049_v26, %v1203_v29 }
 0x6d8   :  { %1336 = vst [vmem:[%s3594_s12 + $0x38] sm:$0xff] %v1320_v21  ;;  %1334 = vst [vmem:[%s3594_s12 + $0x28] sm:$0xff] %v1318_v1  ;;  %v1350_v40 = vadd.f32 %v1349_v34, %v3201_v28  ;;  %v1257_v55 = vadd.f32 %v3186_v35, %v1241_v32  ;;  %v1255_v56 = vadd.f32 %v3186_v35, %v1239_v36 }
 0x6d9   :  { %v1258_v38 = vadd.f32 %v3186_v35, %v1242_v23  ;;  %v1256_v42 = vadd.f32 %v3186_v35, %v1240_v52 }
 0x6da   :  { %v3256_v46 = vmul.f32 %v1257_v55, %v2794_v24  ;;  %v3259_v62 = vmul.f32 %v1255_v56, %v2777_v6  ;;  %v1351_v51 = vadd.f32 %v1350_v40, %v3214_v37 }
 0x6db   :  { %v3263_v29 = vmul.f32 %v1258_v38, %v2798_v54  ;;  %v3266_v34 = vmul.f32 %v1256_v42, %v2781_v31  ;;  %v2080_v32 = vpop.f32.mrb[28].mxu1 }
 0x6dc   :  { %vm1290_vm13 = vcmp.ge.f32.partialorder %v3256_v46, 0.0  ;;  %v1307_v52 = vmul.f32 %v3141_v49, %v3256_v46  ;;  %vm1288_vm14 = vcmp.ge.f32.partialorder %v3259_v62, 0.0  ;;  %v1305_v36 = vmul.f32 %v3141_v49, %v3259_v62  ;;  %v1216_v21 = vpop.f32.mrb[29].mxu1 }
 0x6dd   :  { %v1352_v1 = vadd.f32 %v1351_v51, %v3259_v62  ;;  %vm1291_vm15 = vcmp.ge.f32.partialorder %v3263_v29, 0.0  ;;  %v1308_v23 = vmul.f32 %v3141_v49, %v3263_v29  ;;  %vm1289_vm0 = vcmp.ge.f32.partialorder %v3266_v34, 0.0  ;;  %v2081_v40 = vpop.f32.mrb[30].mxu1 }
 0x6de   :  { %v1323_v55 = vsel %vm1290_vm13, %v3256_v46, %v1307_v52  ;;  %v1321_v56 = vsel %vm1288_vm14, %v3259_v62, %v1305_v36  ;;  %v1306_v38 = vmul.f32 %v3141_v49, %v3266_v34  ;;  %v1245_v42 = vmul.f32 %v3071_v3, %v2080_v32  ;;  %v1219_v43 = vpop.f32.mrb[31].mxu1 }
 0x6df   :  { %1339 = vst [vmem:[%s3594_s12 + $0x50] sm:$0xff] %v1323_v55  ;;  %1337 = vst [vmem:[%s3594_s12 + $0x40] sm:$0xff] %v1321_v56  ;;  %v1324_v51 = vsel %vm1291_vm15, %v3263_v29, %v1308_v23  ;;  %v1353_v52 = vadd.f32 %v1352_v1, %v3266_v34  ;;  %v1243_v36 = vmul.f32 %v3063_v16, %v1216_v21 }
 0x6e0   :  { %v1246_v60 = vmul.f32 %v3073_v25, %v2081_v40  ;;  %1340 = vst [vmem:[%s3594_s12 + $0x58] sm:$0xff] %v1324_v51  ;;  %v1322_v32 = vsel %vm1289_vm0, %v3266_v34, %v1306_v38  ;;  %v1261_v55 = vadd.f32 %v3186_v35, %v1245_v42  ;;  %v1244_v0 = vmul.f32 %v3065_v30, %v1219_v43 }
 0x6e1   :  { %1338 = vst [vmem:[%s3594_s12 + $0x48] sm:$0xff] %v1322_v32  ;;  %v1354_v1 = vadd.f32 %v1353_v52, %v3256_v46  ;;  %v1259_v21 = vadd.f32 %v3186_v35, %v1243_v36 }
 0x6e2   :  { %v1262_v23 = vadd.f32 %v3186_v35, %v1246_v60  ;;  %v1277_v40 = vmul.f32 %v1261_v55, %v2828_v19  ;;  %v1260_v56 = vadd.f32 %v3186_v35, %v1244_v0 }
 0x6e3   :  { %v1275_v38 = vmul.f32 %v1259_v21, %v2809_v59  ;;  %v1355_v42 = vadd.f32 %v1354_v1, %v3263_v29 }
 0x6e4   :  { %v1278_v43 = vmul.f32 %v1262_v23, %v2830_v4  ;;  %vm1294_vm1 = vcmp.ge.f32.partialorder %v1277_v40, 0.0  ;;  %v1311_v51 = vmul.f32 %v3141_v49, %v1277_v40  ;;  %v1276_v32 = vmul.f32 %v1260_v56, %v2814_v57 }
 0x6e5   :  { %vm1292_vm2 = vcmp.ge.f32.partialorder %v1275_v38, 0.0  ;;  %v1309_v52 = vmul.f32 %v3141_v49, %v1275_v38  ;;  %v1356_v36 = vadd.f32 %v1355_v42, %v1275_v38 }
 0x6e6   :  { %vm1295_vm3 = vcmp.ge.f32.partialorder %v1278_v43, 0.0  ;;  %v1327_v60 = vsel %vm1294_vm1, %v1277_v40, %v1311_v51  ;;  %v1312_v55 = vmul.f32 %v3141_v49, %v1278_v43  ;;  %vm1293_vm4 = vcmp.ge.f32.partialorder %v1276_v32, 0.0 }
 0x6e7   :  { %v1310_v0 = vmul.f32 %v3141_v49, %v1276_v32  ;;  %1343 = vst [vmem:[%s3594_s12 + $0x70] sm:$0xff] %v1327_v60  ;;  %v1325_v35 = vsel %vm1292_vm2, %v1275_v38, %v1309_v52  ;;  %v1357_v1 = vadd.f32 %v1356_v36, %v1276_v32 }
 0x6e8   :  { %1341 = vst [vmem:[%s3594_s12 + $0x60] sm:$0xff] %v1325_v35  ;;  %v1328_v21 = vsel %vm1295_vm3, %v1278_v43, %v1312_v55 }
 0x6e9   :  { %v1326_v23 = vsel %vm1293_vm4, %v1276_v32, %v1310_v0  ;;  %1344 = vst [vmem:[%s3594_s12 + $0x78] sm:$0xff] %v1328_v21  ;;  %v1358_v49 = vadd.f32 %v1357_v1, %v1277_v40 }
 0x6ea   :  { %1342 = vst [vmem:[%s3594_s12 + $0x68] sm:$0xff] %v1326_v23 }
 0x6eb   :  { %v1359_v56 = vadd.f32 %v1358_v49, %v1278_v43 }
 0x6ed   :  { %v1360_v42 = vrot.slane %v1359_v56, 4 }
 0x6ef   :  { %v1361_v51 = vadd.f32 %v1360_v42, %v1359_v56 }
 0x6f1   :  { %v1362_v52 = vrot.slane %v1361_v51, 2 }
 0x6f3   :  { %v1363_v36 = vadd.f32 %v1362_v52, %v1361_v51 }
 0x6f5   :  { %v1364_v60 = vrot.slane %v1363_v36, 1 }
 0x6f7   :  { %v1365_v61 = vadd.f32 %v1364_v60, %v1363_v36 }
 0x6f9   :  { %v1366_v47 = vmul.f32 0.0625, %v1365_v61 }
 0x6fb   :  { %v3328_v35 = vsub.f32 %v1276_v32, %v1366_v47  ;;  %v3331_v55 = vsub.f32 %v3150_v48, %v1366_v47  ;;  %v3334_v0 = vsub.f32 %v3163_v17, %v1366_v47  ;;  %v3337_v21 = vsub.f32 %v3146_v45, %v1366_v47 }
 0x6fc   :  { %v3340_v1 = vsub.f32 %v3157_v50, %v1366_v47  ;;  %v3343_v23 = vsub.f32 %v3211_v5, %v1366_v47  ;;  %v3346_v49 = vsub.f32 %v3217_v58, %v1366_v47  ;;  %v3349_v61 = vsub.f32 %v3201_v28, %v1366_v47 }
 0x6fd   :  { %v3352_v48 = vsub.f32 %v3214_v37, %v1366_v47  ;;  %v3355_v17 = vsub.f32 %v3259_v62, %v1366_v47  ;;  %v3358_v45 = vsub.f32 %v3266_v34, %v1366_v47  ;;  %v3361_v50 = vsub.f32 %v3256_v46, %v1366_v47 }
 0x6fe   :  { %v3364_v5 = vsub.f32 %v3263_v29, %v1366_v47  ;;  %v3366_v58 = vsub.f32 %v1275_v38, %v1366_v47  ;;  %v3368_v32 = vsub.f32 %v1277_v40, %v1366_v47  ;;  %v3370_v28 = vsub.f32 %v1278_v43, %v1366_v47 }
 0x6ff   :  { %v1383_v37 = vmul.f32 %v3331_v55, %v3331_v55  ;;  %v1384_v62 = vmul.f32 %v3334_v0, %v3334_v0  ;;  %v1385_v34 = vmul.f32 %v3337_v21, %v3337_v21  ;;  %v1386_v38 = vmul.f32 %v3340_v1, %v3340_v1 }
 0x700   :  { %v1387_v47 = vmul.f32 %v3343_v23, %v3343_v23  ;;  %v1388_v56 = vmul.f32 %v3346_v49, %v3346_v49  ;;  %v1389_v52 = vmul.f32 %v3349_v61, %v3349_v61 }
 0x701   :  { %v1399_v46 = vmul.f32 %v1383_v37, %v2759_v15  ;;  %v1400_v29 = vmul.f32 %v1384_v62, %v2732_v8  ;;  %v1401_v40 = vmul.f32 %v1385_v34, %v2734_v9  ;;  %v1402_v42 = vmul.f32 %v1386_v38, %v2736_v11 }
 0x702   :  { %v1403_v36 = vmul.f32 %v1387_v47, %v2738_v12  ;;  %v1390_v37 = vmul.f32 %v3352_v48, %v3352_v48  ;;  %v1404_v62 = vmul.f32 %v1388_v56, %v2740_v14  ;;  %v1391_v34 = vmul.f32 %v3355_v17, %v3355_v17 }
 0x703   :  { %v1415_v43 = vadd.f32 %v1400_v29, %v1399_v46  ;;  %v1405_v46 = vmul.f32 %v1389_v52, %v2743_v20  ;;  %v1392_v38 = vmul.f32 %v3358_v45, %v3358_v45  ;;  %v1393_v47 = vmul.f32 %v3361_v50, %v3361_v50 }
 0x704   :  { %v1394_v56 = vmul.f32 %v3364_v5, %v3364_v5 }
 0x705   :  { %v1416_v51 = vadd.f32 %v1415_v43, %v1401_v40  ;;  %v1406_v40 = vmul.f32 %v1390_v37, %v2762_v41  ;;  %v1409_v52 = vmul.f32 %v1393_v47, %v2794_v24  ;;  %v1396_v37 = vmul.f32 %v3328_v35, %v3328_v35 }
 0x707   :  { %v1417_v60 = vadd.f32 %v1416_v51, %v1402_v42  ;;  %v1407_v42 = vmul.f32 %v1391_v34, %v2777_v6  ;;  %v1397_v34 = vmul.f32 %v3368_v32, %v3368_v32 }
 0x709   :  { %v1418_v30 = vadd.f32 %v1417_v60, %v1403_v36  ;;  %v1408_v36 = vmul.f32 %v1392_v38, %v2781_v31  ;;  %v1412_v38 = vmul.f32 %v1396_v37, %v2814_v57  ;;  %v1413_v47 = vmul.f32 %v1397_v34, %v2828_v19 }
 0x70b   :  { %v1419_v29 = vadd.f32 %v1418_v30, %v1404_v62  ;;  %v1395_v30 = vmul.f32 %v3366_v58, %v3366_v58 }
 0x70d   :  { %v1420_v43 = vadd.f32 %v1419_v29, %v1405_v46  ;;  %v1410_v46 = vmul.f32 %v1394_v56, %v2798_v54 }
 0x70f   :  { %v1421_v51 = vadd.f32 %v1420_v43, %v1406_v40  ;;  %v1411_v40 = vmul.f32 %v1395_v30, %v2809_v59 }
 0x711   :  { %v1422_v60 = vadd.f32 %v1421_v51, %v1407_v42  ;;  %v1398_v42 = vmul.f32 %v3370_v28, %v3370_v28 }
 0x713   :  { %v1423_v62 = vadd.f32 %v1422_v60, %v1408_v36  ;;  %v1414_v60 = vmul.f32 %v1398_v42, %v2830_v4 }
 0x715   :  { %v1424_v29 = vadd.f32 %v1423_v62, %v1409_v52 }
 0x717   :  { %v1425_v43 = vadd.f32 %v1424_v29, %v1410_v46 }
 0x719   :  { %v1426_v51 = vadd.f32 %v1425_v43, %v1411_v40  ;;  %v3423_v40 = vld [vmem:[%s3595_s9] ss:$0 sm:$0xff] }
 0x71b   :  { %v1427_v36 = vadd.f32 %v1426_v51, %v1412_v38 }
 0x71d   :  { %v1428_v16 = vadd.f32 %v1427_v36, %v1413_v47 }
 0x71f   :  { %v1429_v56 = vadd.f32 %v1428_v16, %v1414_v60 }
 0x721   :  { %v1430_v52 = vrot.slane %v1429_v56, 4 }
 0x723   :  { %v1431_v62 = vadd.f32 %v1430_v52, %v1429_v56 }
 0x725   :  { %v1432_v25 = vrot.slane %v1431_v62, 2 }
 0x727   :  { %v1433_v3 = vadd.f32 %v1432_v25, %v1431_v62 }
 0x729   :  { %v1434_v26 = vrot.slane %v1433_v3, 1 }
 0x72b   :  { %v1435_v30 = vadd.f32 %v1434_v26, %v1433_v3  ;;  %v3432_v26 = vld [vmem:[%s3596_s10] ss:$0 sm:$0xff] }
 0x72d   :  { %v1436_v46 = vmul.f32 0.0625, %v1435_v30 }
 0x72f   :  { %v1437_v29 = vadd.f32 1e-05, %v1436_v46 }
 0x731   :  { %2236 = vrsqrt.f32 %v1437_v29 }
 0x73b   :  { %v2237_v37 = vpop.eup %2236 }
 0x73c   :  { %v1439_v34 = vmul.f32 %v2237_v37, %v3331_v55  ;;  %v1440_v43 = vmul.f32 %v2237_v37, %v3334_v0  ;;  %v1441_v16 = vmul.f32 %v2237_v37, %v3337_v21  ;;  %v1442_v38 = vmul.f32 %v2237_v37, %v3340_v1 }
 0x73d   :  { %v1443_v3 = vmul.f32 %v2237_v37, %v3343_v23  ;;  %v1444_v25 = vmul.f32 %v2237_v37, %v3346_v49  ;;  %v1445_v42 = vmul.f32 %v2237_v37, %v3349_v61  ;;  %v1446_v51 = vmul.f32 %v2237_v37, %v3352_v48 }
 0x73e   :  { %v1462_v55 = vmul.f32 %v3423_v40, %v1439_v34  ;;  %v1463_v0 = vmul.f32 %v3423_v40, %v1440_v43  ;;  %v1464_v21 = vmul.f32 %v3423_v40, %v1441_v16  ;;  %v1465_v1 = vmul.f32 %v3423_v40, %v1442_v38 }
 0x73f   :  { %v1466_v47 = vmul.f32 %v3423_v40, %v1443_v3  ;;  %v1467_v36 = vmul.f32 %v3423_v40, %v1444_v25  ;;  %v1468_v23 = vmul.f32 %v3423_v40, %v1445_v42  ;;  %v1469_v49 = vmul.f32 %v3423_v40, %v1446_v51 }
 0x740   :  { %v1485_v61 = vadd.f32 %v3432_v26, %v1462_v55  ;;  %v1486_v48 = vadd.f32 %v3432_v26, %v1463_v0  ;;  %v1487_v60 = vadd.f32 %v3432_v26, %v1464_v21  ;;  %v1488_v56 = vadd.f32 %v3432_v26, %v1465_v1 }
 0x741   :  { %v1489_v52 = vadd.f32 %v3432_v26, %v1466_v47  ;;  %v1490_v62 = vadd.f32 %v3432_v26, %v1467_v36  ;;  %v1491_v30 = vadd.f32 %v3432_v26, %v1468_v23  ;;  %v1492_v46 = vadd.f32 %v3432_v26, %v1469_v49 }
 0x742   :  { %v1501_v29 = vmax.f32 %v1485_v61, 0.0  ;;  %v1502_v34 = vmax.f32 %v1486_v48, 0.0  ;;  %v1503_v43 = vmax.f32 %v1487_v60, 0.0  ;;  %v1504_v16 = vmax.f32 %v1488_v56, 0.0 }
 0x743   :  { %v1505_v38 = vmax.f32 %v1489_v52, 0.0  ;;  %v1506_v3 = vmax.f32 %v1490_v62, 0.0  ;;  %v1507_v25 = vmax.f32 %v1491_v30, 0.0  ;;  %v1508_v42 = vmax.f32 %v1492_v46, 0.0 }
 0x744   :  { %v1517_v51 = vmul.f32 %v1501_v29, %v2759_v15  ;;  %v1518_v55 = vmul.f32 %v1502_v34, %v2732_v8  ;;  %v1519_v0 = vmul.f32 %v1503_v43, %v2734_v9  ;;  %v1520_v21 = vmul.f32 %v1504_v16, %v2736_v11 }
 0x745   :  { %v1521_v1 = vmul.f32 %v1505_v38, %v2738_v12  ;;  %v1522_v47 = vmul.f32 %v1506_v3, %v2740_v14  ;;  %v1523_v36 = vmul.f32 %v1507_v25, %v2743_v20  ;;  %v1524_v23 = vmul.f32 %v1508_v42, %v2762_v41 }
 0x746   :  { %v1549_v49 = vpack.c.bf16 %v1518_v55, %v1517_v51  ;;  %v1550_v61 = vpack.c.bf16 %v1520_v21, %v1519_v0  ;;  %v1447_v48 = vmul.f32 %v2237_v37, %v3355_v17  ;;  %v1448_v15 = vmul.f32 %v2237_v37, %v3358_v45 }
 0x747   :  { %v1551_v60 = vpack.c.bf16 %v1522_v47, %v1521_v1  ;;  %v1552_v8 = vpack.c.bf16 %v1524_v23, %v1523_v36  ;;  %v1449_v9 = vmul.f32 %v2237_v37, %v3361_v50  ;;  %v1450_v11 = vmul.f32 %v2237_v37, %v3364_v5 }
 0x748   :  { %2098 = vmatprep.mubr.bf16.mxu1 %v1549_v49  ;;  %v1470_v12 = vmul.f32 %v3423_v40, %v1447_v48  ;;  %v1471_v14 = vmul.f32 %v3423_v40, %v1448_v15  ;;  %v1451_v20 = vmul.f32 %v2237_v37, %v3366_v58  ;;  %v1452_v41 = vmul.f32 %v2237_v37, %v3328_v35 }
 0x749   :  { %2099 = vmatmul.mubr.bf16.vlgmr.msra.gmra.mrb[32].mxu1 %v1550_v61  ;;  %v1472_v17 = vmul.f32 %v3423_v40, %v1449_v9  ;;  %v1473_v45 = vmul.f32 %v3423_v40, %v1450_v11  ;;  %v1453_v56 = vmul.f32 %v2237_v37, %v3368_v32  ;;  %v1454_v50 = vmul.f32 %v2237_v37, %v3370_v28 }
 0x74a   :  { %2102 = vmatprep.mubr.bf16.mxu1 %v1551_v60  ;;  %v1493_v5 = vadd.f32 %v3432_v26, %v1470_v12  ;;  %v1494_v52 = vadd.f32 %v3432_v26, %v1471_v14  ;;  %v1474_v62 = vmul.f32 %v3423_v40, %v1451_v20  ;;  %v1475_v58 = vmul.f32 %v3423_v40, %v1452_v41 }
 0x74b   :  { %v1495_v35 = vadd.f32 %v3432_v26, %v1472_v17  ;;  %v1496_v30 = vadd.f32 %v3432_v26, %v1473_v45  ;;  %v1476_v46 = vmul.f32 %v3423_v40, %v1453_v56  ;;  %v1477_v29 = vmul.f32 %v3423_v40, %v1454_v50 }
 0x74c   :  { %v1509_v32 = vmax.f32 %v1493_v5, 0.0  ;;  %v1510_v34 = vmax.f32 %v1494_v52, 0.0  ;;  %v1497_v28 = vadd.f32 %v3432_v26, %v1474_v62  ;;  %v1498_v37 = vadd.f32 %v3432_v26, %v1475_v58 }
 0x74d   :  { %v1511_v43 = vmax.f32 %v1495_v35, 0.0  ;;  %v1512_v16 = vmax.f32 %v1496_v30, 0.0  ;;  %v1499_v38 = vadd.f32 %v3432_v26, %v1476_v46  ;;  %v1500_v3 = vadd.f32 %v3432_v26, %v1477_v29  ;;  %v3650_v46 = vld [vmem:[#allocation15_spill] sm:$0xff] }
 0x74e   :  { %v1525_v25 = vmul.f32 %v1509_v32, %v2777_v6  ;;  %v1526_v42 = vmul.f32 %v1510_v34, %v2781_v31  ;;  %v1513_v51 = vmax.f32 %v1497_v28, 0.0  ;;  %v1514_v55 = vmax.f32 %v1498_v37, 0.0 }
 0x74f   :  { %v1527_v40 = vmul.f32 %v1511_v43, %v2794_v24  ;;  %v1528_v0 = vmul.f32 %v1512_v16, %v2798_v54  ;;  %v1515_v21 = vmax.f32 %v1499_v38, 0.0  ;;  %v1516_v1 = vmax.f32 %v1500_v3, 0.0  ;;  %v3651_v16 = vld [vmem:[#allocation6_spill] sm:$0xff]  ;;  %v3652_v3 = vld [vmem:[#allocation8_spill] sm:$0xff] }
 0x750   :  { %v1553_v47 = vpack.c.bf16 %v1526_v42, %v1525_v25  ;;  %v1529_v36 = vmul.f32 %v1513_v51, %v2809_v59  ;;  %v1530_v23 = vmul.f32 %v1514_v55, %v2814_v57  ;;  %v3653_v51 = vld [vmem:[#allocation3_spill] sm:$0xff] }
 0x751   :  { %2103 = vmatmul.mubr.bf16.gmra.mrb[36].mxu1 %v1552_v8  ;;  %v1554_v49 = vpack.c.bf16 %v1528_v0, %v1527_v40  ;;  %v1531_v26 = vmul.f32 %v1515_v21, %v2828_v19  ;;  %v1532_v6 = vmul.f32 %v1516_v1, %v2830_v4  ;;  %v3654_v40 = vld [vmem:[#allocation4_spill] sm:$0xff] }
 0x752   :  { %2106 = vmatprep.mubr.bf16.mxu1 %v1553_v47  ;;  %v1555_v31 = vpack.c.bf16 %v1530_v23, %v1529_v36  ;;  %v3655_v47 = vld [vmem:[#allocation9_spill] sm:$0xff]  ;;  %v3656_v36 = vld [vmem:[#allocation12_spill] sm:$0xff]  ;;  %v3657_v23 = vld [vmem:[#allocation10_spill] sm:$0xff] }
 0x753   :  { %v1556_v61 = vpack.c.bf16 %v1532_v6, %v1531_v26  ;;  %v3659_v26 = vld [vmem:[#allocation11_spill] sm:$0xff]  ;;  %v3660_v6 = vld [vmem:[#allocation14_spill] sm:$0xff] }
 0x759   :  { %2107 = vmatmul.mubr.bf16.gmra.mrb[40].mxu1 %v1554_v49  ;;  %v3658_v49 = vld [vmem:[#allocation13_spill] sm:$0xff] }
 0x75a   :  { %2110 = vmatprep.mubr.bf16.mxu1 %v1555_v31 }
 0x761   :  { %2111 = vmatmul.mubr.bf16.gmra.mrb[44].mxu1 %v1556_v61  ;;  %v1857_v61 = vld [vmem:[%s3597_s8] ss:$0 sm:$0xff] }
 0x762   :  { %2138 = vmatprep.mubr.bf16.mxu1 %v2974_v39 }
 0x81c   :  { %v2100_v24 = vpop.f32.mrb[32].mxu1 }
 0x81d   :  { %v1599_v54 = vpop.f32.mrb[33].mxu1  ;;  %v1664_v59 = vmul.f32 %v3023_v27, %v2100_v24 }
 0x81e   :  { %v2101_v48 = vpop.f32.mrb[34].mxu1  ;;  %v1662_v19 = vmul.f32 %v3015_v53, %v1599_v54 }
 0x81f   :  { %v1665_v57 = vmul.f32 %v3025_v13, %v2101_v48  ;;  %v1602_v15 = vpop.f32.mrb[35].mxu1 }
 0x820   :  { %v1663_v4 = vmul.f32 %v3017_v33, %v1602_v15 }
 0x821   :  { %v1679_v60 = vpack.c.bf16 %v1665_v57, %v1664_v59 }
 0x822   :  { %v1678_v8 = vpack.c.bf16 %v1663_v4, %v1662_v19 }
 0x824   :  { %v2104_v9 = vpop.f32.mrb[36].mxu1  ;;  %2114 = vmatprep.subr.bf16.mxu0 %v1678_v8  ;;  %2146 = vmatprep.subr.bf16.mxu1 %v1678_v8 }
 0x825   :  { %v1615_v11 = vpop.f32.mrb[37].mxu1  ;;  %2115 = vmatpush3.bf16.msra.mxu0 %v1678_v8  ;;  %2154 = vmatpush3.bf16.msra.mxu1 %v1678_v8  ;;  %v1668_v12 = vmul.f32 %v3039_v18, %v2104_v9 }
 0x826   :  { %v2105_v39 = vpop.f32.mrb[38].mxu1  ;;  %2116 = vmatprep.subr.bf16.mxu0 %v1679_v60  ;;  %2147 = vmatprep.subr.bf16.mxu1 %v1679_v60  ;;  %v1666_v41 = vmul.f32 %v3031_v2, %v1615_v11 }
 0x827   :  { %v1669_v14 = vmul.f32 %v3041_v10, %v2105_v39  ;;  %v1618_v20 = vpop.f32.mrb[39].mxu1 }
 0x828   :  { %v1667_v17 = vmul.f32 %v3033_v63, %v1618_v20 }
 0x829   :  { %v1681_v45 = vpack.c.bf16 %v1669_v14, %v1668_v12  ;;  %2117 = vmatpush3.bf16.msra.mxu0 %v1679_v60  ;;  %2155 = vmatpush3.bf16.msra.mxu1 %v1679_v60 }
 0x82a   :  { %v1680_v56 = vpack.c.bf16 %v1667_v17, %v1666_v41 }
 0x82c   :  { %v2108_v50 = vpop.f32.mrb[40].mxu1  ;;  %2118 = vmatprep.subr.bf16.mxu0 %v1680_v56  ;;  %2148 = vmatprep.subr.bf16.mxu1 %v1680_v56 }
 0x82d   :  { %v1631_v5 = vpop.f32.mrb[41].mxu1  ;;  %2119 = vmatpush3.bf16.msra.mxu0 %v1680_v56  ;;  %2156 = vmatpush3.bf16.msra.mxu1 %v1680_v56  ;;  %v1672_v62 = vmul.f32 %v3055_v22, %v2108_v50 }
 0x82e   :  { %v2109_v52 = vpop.f32.mrb[42].mxu1  ;;  %2120 = vmatprep.subr.bf16.mxu0 %v1681_v45  ;;  %2149 = vmatprep.subr.bf16.mxu1 %v1681_v45  ;;  %v1670_v30 = vmul.f32 %v3047_v44, %v1631_v5 }
 0x82f   :  { %v1673_v58 = vmul.f32 %v3057_v7, %v2109_v52  ;;  %v1634_v35 = vpop.f32.mrb[43].mxu1 }
 0x830   :  { %v1671_v29 = vmul.f32 %v3650_v46, %v1634_v35 }
 0x831   :  { %v1683_v32 = vpack.c.bf16 %v1673_v58, %v1672_v62  ;;  %2121 = vmatpush3.bf16.msra.mxu0 %v1681_v45  ;;  %2157 = vmatpush3.bf16.msra.mxu1 %v1681_v45 }
 0x832   :  { %v1682_v34 = vpack.c.bf16 %v1671_v29, %v1670_v30 }
 0x834   :  { %v2112_v28 = vpop.f32.mrb[44].mxu1  ;;  %2122 = vmatprep.subr.bf16.mxu0 %v1682_v34  ;;  %2150 = vmatprep.subr.bf16.mxu1 %v1682_v34 }
 0x835   :  { %v1647_v37 = vpop.f32.mrb[45].mxu1  ;;  %2123 = vmatpush3.bf16.msra.mxu0 %v1682_v34  ;;  %2158 = vmatpush3.bf16.msra.mxu1 %v1682_v34  ;;  %v1676_v38 = vmul.f32 %v3651_v16, %v2112_v28 }
 0x836   :  { %v2113_v43 = vpop.f32.mrb[46].mxu1  ;;  %2124 = vmatprep.subr.bf16.mxu0 %v1683_v32  ;;  %2151 = vmatprep.subr.bf16.mxu1 %v1683_v32  ;;  %v1674_v55 = vmul.f32 %v3653_v51, %v1647_v37 }
 0x837   :  { %v1677_v25 = vmul.f32 %v3652_v3, %v2113_v43  ;;  %v1650_v42 = vpop.f32.mrb[47].mxu1 }
 0x838   :  { %v1675_v0 = vmul.f32 %v3654_v40, %v1650_v42 }
 0x839   :  { %v1685_v21 = vpack.c.bf16 %v1677_v25, %v1676_v38  ;;  %2125 = vmatpush3.bf16.msra.mxu0 %v1683_v32  ;;  %2159 = vmatpush3.bf16.msra.mxu1 %v1683_v32 }
 0x83a   :  { %v1684_v1 = vpack.c.bf16 %v1675_v0, %v1674_v55 }
 0x83c   :  { %2126 = vmatprep.subr.bf16.mxu0 %v1684_v1  ;;  %2152 = vmatprep.subr.bf16.mxu1 %v1684_v1 }
 0x83d   :  { %2127 = vmatpush3.bf16.msra.mxu0 %v1684_v1  ;;  %2160 = vmatpush3.bf16.msra.mxu1 %v1684_v1 }
 0x83e   :  { %2128 = vmatprep.subr.bf16.mxu0 %v1685_v21  ;;  %2153 = vmatprep.subr.bf16.mxu1 %v1685_v21 }
 0x841   :  { %2129 = vmatpush3.bf16.msra.mxu0 %v1685_v21  ;;  %2161 = vmatpush3.bf16.msra.mxu1 %v1685_v21 }
 0x844   :  { %2131 = vmatmul.mubr.bf16.vlgmr.msra.gmra.mrb[32].mxu0 %v3655_v47  ;;  %2139 = vmatmul.mubr.bf16.vlgmr.msra.gmra.mrb[48].mxu1 %v3656_v36 }
 0x845   :  { %2134 = vmatprep.mubr.bf16.mxu0 %v3657_v23  ;;  %2142 = vmatprep.mubr.bf16.mxu1 %v3658_v49 }
 0x84c   :  { %2135 = vmatmul.mubr.bf16.gmra.mrb[36].mxu0 %v3659_v26  ;;  %2143 = vmatmul.mubr.bf16.gmra.mrb[52].mxu1 %v3660_v6 }
 0x917   :  { %v2132_v31 = vpop.f32.mrb[32].mxu0  ;;  %v2140_v24 = vpop.f32.mrb[48].mxu1 }
 0x918   :  { %v1785_v54 = vmul.f32 %v3023_v27, %v2132_v31  ;;  %v1793_v48 = vmul.f32 %v3055_v22, %v2140_v24  ;;  %v1720_v59 = vpop.f32.mrb[33].mxu0  ;;  %v1752_v57 = vpop.f32.mrb[49].mxu1 }
 0x919   :  { %v1783_v15 = vmul.f32 %v3015_v53, %v1720_v59  ;;  %v1791_v19 = vmul.f32 %v3047_v44, %v1752_v57  ;;  %v2133_v4 = vpop.f32.mrb[34].mxu0  ;;  %v2141_v60 = vpop.f32.mrb[50].mxu1 }
 0x91a   :  { %v1808_v8 = vadd.f32 %v1857_v61, %v1785_v54  ;;  %v1816_v9 = vadd.f32 %v1857_v61, %v1793_v48  ;;  %v1786_v11 = vmul.f32 %v3025_v13, %v2133_v4  ;;  %v1794_v39 = vmul.f32 %v3057_v7, %v2141_v60  ;;  %v1723_v12 = vpop.f32.mrb[35].mxu0  ;;  %v1755_v14 = vpop.f32.mrb[51].mxu1 }
 0x91b   :  { %v1806_v20 = vadd.f32 %v1857_v61, %v1783_v15  ;;  %v1814_v27 = vadd.f32 %v1857_v61, %v1791_v19  ;;  %v1784_v22 = vmul.f32 %v3017_v33, %v1723_v12  ;;  %v1792_v41 = vmul.f32 %v3650_v46, %v1755_v14 }
 0x91c   :  { %1824 = vst [vmem:[%s3598_s11 + $0x10] sm:$0xff] %v1808_v8  ;;  %1832 = vst [vmem:[%s3598_s11 + $0x50] sm:$0xff] %v1816_v9  ;;  %v1809_v53 = vadd.f32 %v1857_v61, %v1786_v11  ;;  %v1817_v13 = vadd.f32 %v1857_v61, %v1794_v39 }
 0x91d   :  { %1822 = vst [vmem:[%s3598_s11] sm:$0xff] %v1806_v20  ;;  %1830 = vst [vmem:[%s3598_s11 + $0x40] sm:$0xff] %v1814_v27  ;;  %v1807_v33 = vadd.f32 %v1857_v61, %v1784_v22  ;;  %v1815_v44 = vadd.f32 %v1857_v61, %v1792_v41 }
 0x91e   :  { %1825 = vst [vmem:[%s3598_s11 + $0x18] sm:$0xff] %v1809_v53  ;;  %1833 = vst [vmem:[%s3598_s11 + $0x58] sm:$0xff] %v1817_v13 }
 0x91f   :  { %1823 = vst [vmem:[%s3598_s11 + $0x8] sm:$0xff] %v1807_v33  ;;  %1831 = vst [vmem:[%s3598_s11 + $0x48] sm:$0xff] %v1815_v44  ;;  %v2136_v7 = vpop.f32.mrb[36].mxu0  ;;  %v2144_v17 = vpop.f32.mrb[52].mxu1 }
 0x920   :  { %v1789_v45 = vmul.f32 %v3039_v18, %v2136_v7  ;;  %v1797_v56 = vmul.f32 %v3651_v16, %v2144_v17  ;;  %v1736_v50 = vpop.f32.mrb[37].mxu0  ;;  %v1768_v5 = vpop.f32.mrb[53].mxu1 }
 0x921   :  { %v1787_v52 = vmul.f32 %v3031_v2, %v1736_v50  ;;  %v1795_v62 = vmul.f32 %v3653_v51, %v1768_v5  ;;  %v2137_v58 = vpop.f32.mrb[38].mxu0  ;;  %v2145_v35 = vpop.f32.mrb[54].mxu1 }
 0x922   :  { %v1812_v30 = vadd.f32 %v1857_v61, %v1789_v45  ;;  %v1820_v46 = vadd.f32 %v1857_v61, %v1797_v56  ;;  %v1790_v29 = vmul.f32 %v3041_v10, %v2137_v58  ;;  %v1798_v32 = vmul.f32 %v3652_v3, %v2145_v35  ;;  %v1739_v34 = vpop.f32.mrb[39].mxu0  ;;  %v1771_v28 = vpop.f32.mrb[55].mxu1 }
 0x923   :  { %v1810_v37 = vadd.f32 %v1857_v61, %v1787_v52  ;;  %v1818_v18 = vadd.f32 %v1857_v61, %v1795_v62  ;;  %v1788_v43 = vmul.f32 %v3033_v63, %v1739_v34  ;;  %v1796_v16 = vmul.f32 %v3654_v40, %v1771_v28 }
 0x924   :  { %1828 = vst [vmem:[%s3598_s11 + $0x30] sm:$0xff] %v1812_v30  ;;  %1836 = vst [vmem:[%s3598_s11 + $0x70] sm:$0xff] %v1820_v46  ;;  %v1813_v2 = vadd.f32 %v1857_v61, %v1790_v29  ;;  %v1821_v10 = vadd.f32 %v1857_v61, %v1798_v32 }
 0x925   :  { %1826 = vst [vmem:[%s3598_s11 + $0x20] sm:$0xff] %v1810_v37  ;;  %1834 = vst [vmem:[%s3598_s11 + $0x60] sm:$0xff] %v1818_v18  ;;  %v1811_v63 = vadd.f32 %v1857_v61, %v1788_v43  ;;  %v1819_v38 = vadd.f32 %v1857_v61, %v1796_v16 }
 0x926   :  { %1829 = vst [vmem:[%s3598_s11 + $0x38] sm:$0xff] %v1813_v2  ;;  %1837 = vst [vmem:[%s3598_s11 + $0x78] sm:$0xff] %v1821_v10 }
 0x927   :  { %1827 = vst [vmem:[%s3598_s11 + $0x28] sm:$0xff] %v1811_v63  ;;  %1835 = vst [vmem:[%s3598_s11 + $0x68] sm:$0xff] %v1819_v38 }

</bundles_post_ra>
